<compile_context>
chip_gen: v7x
topology: tpu7x:2x2x1
jax: 0.10.0
libtpu: 0.0.40
codegen_flags: <defaults>
</compile_context>

<pallas_src>
import jax
import jax.numpy as jnp
from jax.experimental import pallas as pl
from jax.experimental.pallas import tpu as pltpu

D_MODEL = 32
N_HEADS = 4
D_HEAD = D_MODEL // N_HEADS
D_FF = 64
LN_EPS = 1e-5
LANE = 128  # lane-tile width used for weight-segment alignment


# ---------------------------------------------------------------------------
# Pallas kernel: whole batch, fully fused decoder layer, no grid.
# ---------------------------------------------------------------------------
def decoder_layer_kernel(x_ref, cross_ref, w_in_ref, w2_ref, vec_ref, o_ref):
    B, S, D = x_ref.shape
    Sc = cross_ref.shape[1]
    H, Dh = N_HEADS, D_HEAD
    f32 = jnp.float32

    # ---- three packed reads (was 16 separate weight/bias refs) -------------
    # Weight slab: 6 segments, each starting at a 128-lane boundary:
    # [self QKV | cross Q | cross KV | self Wout | cross Wout | FFN W1]
    w_in = w_in_ref[...].astype(f32)                       # (D, 6*LANE)
    w_qkv_s = w_in[:, 0 * LANE:0 * LANE + 3 * D]
    wq_c    = w_in[:, 1 * LANE:1 * LANE + D]
    w_kv_c  = w_in[:, 2 * LANE:2 * LANE + 2 * D]
    wo_s    = w_in[:, 3 * LANE:3 * LANE + D]
    wo_c    = w_in[:, 4 * LANE:4 * LANE + D]
    w1      = w_in[:, 5 * LANE:5 * LANE + D_FF]
    w2 = w2_ref[...].astype(f32)                           # (D_FF, D)

    # Vector slab: one padded 128-lane row per bias, then gamma/beta rows.
    vec = vec_ref[...].astype(f32)                         # (16, LANE)
    b_qkv_s = vec[0:1, 0:3 * D]
    bq_c    = vec[1:2, 0:D]
    b_kv_c  = vec[2:3, 0:2 * D]
    bo_s    = vec[3:4, 0:D]
    bo_c    = vec[4:5, 0:D]
    b1      = vec[5:6, 0:D_FF]
    b2      = vec[6:7, 0:D]
    gamma   = vec[7:10, 0:D]
    beta    = vec[10:13, 0:D]

    # Flattened (B*S, D) slabs so every dense projection is one wide MXU push.
    x2d = x_ref[...].astype(f32).reshape(B * S, D)
    mem2d = cross_ref[...].astype(f32).reshape(B * Sc, D)

    def layer_norm(v, idx):
        g = gamma[idx:idx + 1, :]
        b = beta[idx:idx + 1, :]
        mu = jnp.mean(v, axis=-1, keepdims=True)
        var = jnp.mean(jnp.square(v - mu), axis=-1, keepdims=True)
        return (v - mu) * jax.lax.rsqrt(var + LN_EPS) * g + b

    scale = 1.0 / float(D_HEAD) ** 0.5                     # compile-time constant

    def attend(q2d, k2d, v2d, s_kv, wo, bo):
        """Multi-head SDPA, all heads batched into one chain (no mask: module passes None)."""
        q3 = q2d.reshape(B, S, D)                          # leading-dim reshapes only
        k3 = k2d.reshape(B, s_kv, D)
        v3 = v2d.reshape(B, s_kv, D)
        # Stack heads along the leading batch axis: z = h * B + b.
        qz = jnp.concatenate([q3[:, :, h * Dh:(h + 1) * Dh] for h in range(H)], axis=0)
        kz = jnp.concatenate([k3[:, :, h * Dh:(h + 1) * Dh] for h in range(H)], axis=0)
        vz = jnp.concatenate([v3[:, :, h * Dh:(h + 1) * Dh] for h in range(H)], axis=0)
        # ONE batched score matmul / softmax / PV matmul over all B*H slices.
        s = jnp.einsum("zqd,zkd->zqk", qz, kz, preferred_element_type=f32) * scale
        s = s - jnp.max(s, axis=-1, keepdims=True)
        p = jnp.exp(s)
        p = p / jnp.sum(p, axis=-1, keepdims=True)         # exact division (review: approx
        #                                                  # reciprocal bought nothing here)
        oz = jnp.einsum("zqk,zkd->zqd", p, vz, preferred_element_type=f32)  # (H*B, S, Dh)
        # Heads back onto the lane axis, then ONE K=D output-projection matmul.
        o2d = jnp.concatenate(
            [oz[h * B:(h + 1) * B].reshape(B * S, Dh) for h in range(H)], axis=-1)
        return jnp.dot(o2d, wo, preferred_element_type=f32) + bo

    # --- self-attention block (dropout == identity in eval mode) -----------
    qkv = jnp.dot(x2d, w_qkv_s, preferred_element_type=f32) + b_qkv_s   # (B*S, 3D)
    # NOTE: if the Mosaic dump shows lane relayouts on these sub-128 slices,
    # split back into three N=32 projection matmuls (review item #11).
    self_out = attend(qkv[:, 0:D], qkv[:, D:2 * D], qkv[:, 2 * D:3 * D],
                      S, wo_s, bo_s)
    x2d = layer_norm(x2d + self_out, 0)

    # --- cross-attention block ---------------------------------------------
    q = jnp.dot(x2d, wq_c, preferred_element_type=f32) + bq_c           # (B*S, D)
    kv = jnp.dot(mem2d, w_kv_c, preferred_element_type=f32) + b_kv_c    # (B*Sc, 2D)
    cross_out = attend(q, kv[:, 0:D], kv[:, D:2 * D], Sc, wo_c, bo_c)
    x2d = layer_norm(x2d + cross_out, 1)

    # --- position-wise FFN (Conv1d kernel_size=1 == dense per token) -------
    y = jnp.maximum(jnp.dot(x2d, w1, preferred_element_type=f32) + b1, 0.0)
    y = jnp.dot(y, w2, preferred_element_type=f32) + b2

    o_ref[...] = layer_norm(x2d + y, 2).reshape(B, S, D).astype(o_ref.dtype)


# ---------------------------------------------------------------------------
# Wrapper: single pallas_call, operands packed wrapper-side into 3 slabs.
# ---------------------------------------------------------------------------
@jax.jit
def decoder_layer(x, cross, params):
    B, S, D = x.shape
    w_self, b_self = params["w_self"], params["b_self"]
    w_cross, b_cross = params["w_cross"], params["b_cross"]

    # Weight slab: every matrix whose input dim is D, each segment padded to a
    # multiple of 128 lanes so in-kernel slices are lane-tile aligned.
    segs = [
        jnp.concatenate([w_self[0], w_self[1], w_self[2]], axis=1),   # self QKV (D, 3D)
        w_cross[0],                                                   # cross Q  (D, D)
        jnp.concatenate([w_cross[1], w_cross[2]], axis=1),            # cross KV (D, 2D)
        w_self[3],                                                    # self Wout
        w_cross[3],                                                   # cross Wout
        params["w1"],                                                 # FFN W1 (D, D_FF)
    ]
    w_in = jnp.concatenate(
        [jnp.pad(s, ((0, 0), (0, (-s.shape[1]) % LANE))) for s in segs], axis=1)

    # Vector slab: all biases + gamma + beta, one 128-lane padded row each.
    rows = [
        jnp.concatenate([b_self[0], b_self[1], b_self[2]])[None, :],   # b self QKV
        b_cross[0][None, :],                                           # b cross Q
        jnp.concatenate([b_cross[1], b_cross[2]])[None, :],            # b cross KV
        b_self[3][None, :],                                            # b self Wout
        b_cross[3][None, :],                                           # b cross Wout
        params["b1"],                                                  # (1, D_FF)
        params["b2"],                                                  # (1, D)
        params["gamma"],                                               # (3, D)
        params["beta"],                                                # (3, D)
    ]
    vec = jnp.zeros((16, LANE), jnp.float32)
    r = 0
    for v in rows:
        vec = vec.at[r:r + v.shape[0], :v.shape[1]].set(v.astype(jnp.float32))
        r += v.shape[0]

    args = (x, cross, w_in, params["w2"], vec)
    vspec = pl.BlockSpec(memory_space=pltpu.MemorySpace.VMEM)
    return pl.pallas_call(
        decoder_layer_kernel,
        out_shape=jax.ShapeDtypeStruct((B, S, D), x.dtype),
        in_specs=[vspec] * len(args),
        out_specs=vspec,
    )(*args)


# ---------------------------------------------------------------------------
# Pure-JAX reference (mirrors the PyTorch forward, eval-mode dropout).
# ---------------------------------------------------------------------------
def decoder_layer_ref(x, cross, params):
    def layer_norm(v, idx):
        mu = jnp.mean(v, axis=-1, keepdims=True)
        var = jnp.mean(jnp.square(v - mu), axis=-1, keepdims=True)
        return (v - mu) * jax.lax.rsqrt(var + LN_EPS) * params["gamma"][idx] + params["beta"][idx]

    def mha(q_in, kv_in, w, b):
        q = q_in @ w[0] + b[0]
        k = kv_in @ w[1] + b[1]
        v = kv_in @ w[2] + b[2]
        B, S, _ = q.shape
        Sc = k.shape[1]
        q = q.reshape(B, S, N_HEADS, D_HEAD)
        k = k.reshape(B, Sc, N_HEADS, D_HEAD)
        v = v.reshape(B, Sc, N_HEADS, D_HEAD)
        s = jnp.einsum("bshd,bthd->bhst", q, k) / jnp.sqrt(jnp.float32(D_HEAD))
        p = jax.nn.softmax(s, axis=-1)
        o = jnp.einsum("bhst,bthd->bshd", p, v).reshape(B, S, N_HEADS * D_HEAD)
        return o @ w[3] + b[3]

    x = x + mha(x, x, params["w_self"], params["b_self"])
    x = layer_norm(x, 0)
    x = layer_norm(x + mha(x, cross, params["w_cross"], params["b_cross"]), 1)
    y = jnp.maximum(x @ params["w1"] + params["b1"][0], 0.0)
    y = y @ params["w2"] + params["b2"][0]
    return layer_norm(x + y, 2)


# ---------------------------------------------------------------------------
def make_params(key):
    ks = jax.random.split(key, 10)
    scale = 0.05
    return {
        "w_self":  scale * jax.random.normal(ks[0], (4, D_MODEL, D_MODEL), jnp.float32),
        "b_self":  scale * jax.random.normal(ks[1], (4, D_MODEL), jnp.float32),
        "w_cross": scale * jax.random.normal(ks[2], (4, D_MODEL, D_MODEL), jnp.float32),
        "b_cross": scale * jax.random.normal(ks[3], (4, D_MODEL), jnp.float32),
        "w1":      scale * jax.random.normal(ks[4], (D_MODEL, D_FF), jnp.float32),
        "b1":      scale * jax.random.normal(ks[5], (1, D_FF), jnp.float32),
        "w2":      scale * jax.random.normal(ks[6], (D_FF, D_MODEL), jnp.float32),
        "b2":      scale * jax.random.normal(ks[7], (1, D_MODEL), jnp.float32),
        "gamma":   1.0 + 0.1 * jax.random.normal(ks[8], (3, D_MODEL), jnp.float32),
        "beta":    0.1 * jax.random.normal(ks[9], (3, D_MODEL), jnp.float32),
    }


if __name__ == "__main__":
    B, S, Sc = 2, 8, 16
    key = jax.random.PRNGKey(0)
    k_x, k_c, k_p = jax.random.split(key, 3)

    x = jax.random.normal(k_x, (B, S, D_MODEL), jnp.float32)
    cross = jax.random.normal(k_c, (B, Sc, D_MODEL), jnp.float32)
    params = make_params(k_p)

    out = decoder_layer(x, cross, params)
    out = jax.block_until_ready(out)

    ref = decoder_layer_ref(x, cross, params)
    assert out.shape == (B, S, D_MODEL)
    # Softmax now uses exact division (no approximate EUP reciprocal); the
    # residual difference vs. the XLA reference is matmul-precision noise, so
    # this conservative tolerance has large margin.
    assert jnp.allclose(out, ref, rtol=2e-3, atol=2e-3), "kernel/reference mismatch"

    print("KERNEL_OK")
</pallas_src>

<mosaic_0001>
module attributes {stable_mosaic.version = 11 : i64} {
  func.func @decoder_layer_kernel(%arg0: memref<2x8x32xf32, #tpu.memory_space<vmem>>, %arg1: memref<2x16x32xf32, #tpu.memory_space<vmem>>, %arg2: memref<32x768xf32, #tpu.memory_space<vmem>>, %arg3: memref<64x32xf32, #tpu.memory_space<vmem>>, %arg4: memref<16x128xf32, #tpu.memory_space<vmem>>, %arg5: memref<2x8x32xf32, #tpu.memory_space<vmem>>) attributes {dimension_semantics = [], scalar_prefetch = 0 : i64, scratch_operands = 0 : i64, tpu.core_type = #tpu.core_type<tc>} {
    %c0 = arith.constant 0 : index
    %c0_0 = arith.constant 0 : index
    %0 = vector.load %arg2[%c0, %c0_0] : memref<32x768xf32, #tpu.memory_space<vmem>>, vector<32x768xf32>
    %1 = vector.extract_strided_slice %0 {offsets = [0, 0], sizes = [32, 96], strides = [1, 1]} : vector<32x768xf32> to vector<32x96xf32>
    %2 = vector.extract_strided_slice %0 {offsets = [0, 128], sizes = [32, 32], strides = [1, 1]} : vector<32x768xf32> to vector<32x32xf32>
    %3 = vector.extract_strided_slice %0 {offsets = [0, 256], sizes = [32, 64], strides = [1, 1]} : vector<32x768xf32> to vector<32x64xf32>
    %4 = vector.extract_strided_slice %0 {offsets = [0, 384], sizes = [32, 32], strides = [1, 1]} : vector<32x768xf32> to vector<32x32xf32>
    %5 = vector.extract_strided_slice %0 {offsets = [0, 512], sizes = [32, 32], strides = [1, 1]} : vector<32x768xf32> to vector<32x32xf32>
    %6 = vector.extract_strided_slice %0 {offsets = [0, 640], sizes = [32, 64], strides = [1, 1]} : vector<32x768xf32> to vector<32x64xf32>
    %c0_1 = arith.constant 0 : index
    %c0_2 = arith.constant 0 : index
    %7 = vector.load %arg3[%c0_1, %c0_2] : memref<64x32xf32, #tpu.memory_space<vmem>>, vector<64x32xf32>
    %c0_3 = arith.constant 0 : index
    %c0_4 = arith.constant 0 : index
    %8 = vector.load %arg4[%c0_3, %c0_4] : memref<16x128xf32, #tpu.memory_space<vmem>>, vector<16x128xf32>
    %9 = vector.extract_strided_slice %8 {offsets = [0, 0], sizes = [1, 96], strides = [1, 1]} : vector<16x128xf32> to vector<1x96xf32>
    %10 = vector.extract_strided_slice %8 {offsets = [1, 0], sizes = [1, 32], strides = [1, 1]} : vector<16x128xf32> to vector<1x32xf32>
    %11 = vector.extract_strided_slice %8 {offsets = [2, 0], sizes = [1, 64], strides = [1, 1]} : vector<16x128xf32> to vector<1x64xf32>
    %12 = vector.extract_strided_slice %8 {offsets = [3, 0], sizes = [1, 32], strides = [1, 1]} : vector<16x128xf32> to vector<1x32xf32>
    %13 = vector.extract_strided_slice %8 {offsets = [4, 0], sizes = [1, 32], strides = [1, 1]} : vector<16x128xf32> to vector<1x32xf32>
    %14 = vector.extract_strided_slice %8 {offsets = [5, 0], sizes = [1, 64], strides = [1, 1]} : vector<16x128xf32> to vector<1x64xf32>
    %15 = vector.extract_strided_slice %8 {offsets = [6, 0], sizes = [1, 32], strides = [1, 1]} : vector<16x128xf32> to vector<1x32xf32>
    %16 = vector.extract_strided_slice %8 {offsets = [7, 0], sizes = [3, 32], strides = [1, 1]} : vector<16x128xf32> to vector<3x32xf32>
    %17 = vector.extract_strided_slice %8 {offsets = [10, 0], sizes = [3, 32], strides = [1, 1]} : vector<16x128xf32> to vector<3x32xf32>
    %c0_5 = arith.constant 0 : index
    %c0_6 = arith.constant 0 : index
    %c0_7 = arith.constant 0 : index
    %18 = vector.load %arg0[%c0_5, %c0_6, %c0_7] : memref<2x8x32xf32, #tpu.memory_space<vmem>>, vector<2x8x32xf32>
    %19 = vector.shape_cast %18 : vector<2x8x32xf32> to vector<16x32xf32>
    %c0_8 = arith.constant 0 : index
    %c0_9 = arith.constant 0 : index
    %c0_10 = arith.constant 0 : index
    %20 = vector.load %arg1[%c0_8, %c0_9, %c0_10] : memref<2x16x32xf32, #tpu.memory_space<vmem>>, vector<2x16x32xf32>
    %21 = vector.shape_cast %20 : vector<2x16x32xf32> to vector<32x32xf32>
    %cst = arith.constant dense<0.000000e+00> : vector<16x96xf32>
    %22 = tpu.matmul %19, %1, %cst {dimension_numbers = #tpu.dot_dimension_numbers<[1], [0], [0], [1], [0, 0, 1, 1], [], []>} : vector<16x32xf32>, vector<32x96xf32>, vector<16x96xf32> -> vector<16x96xf32>
    %23 = vector.broadcast %9 : vector<1x96xf32> to vector<16x96xf32>
    %24 = arith.addf %22, %23 : vector<16x96xf32>
    %25 = vector.extract_strided_slice %24 {offsets = [0, 0], sizes = [16, 32], strides = [1, 1]} : vector<16x96xf32> to vector<16x32xf32>
    %26 = vector.extract_strided_slice %24 {offsets = [0, 32], sizes = [16, 32], strides = [1, 1]} : vector<16x96xf32> to vector<16x32xf32>
    %27 = vector.extract_strided_slice %24 {offsets = [0, 64], sizes = [16, 32], strides = [1, 1]} : vector<16x96xf32> to vector<16x32xf32>
    %28 = vector.shape_cast %25 : vector<16x32xf32> to vector<2x8x32xf32>
    %29 = vector.shape_cast %26 : vector<16x32xf32> to vector<2x8x32xf32>
    %30 = vector.shape_cast %27 : vector<16x32xf32> to vector<2x8x32xf32>
    %31 = vector.extract_strided_slice %28 {offsets = [0, 0, 0], sizes = [2, 8, 8], strides = [1, 1, 1]} : vector<2x8x32xf32> to vector<2x8x8xf32>
    %32 = vector.extract_strided_slice %28 {offsets = [0, 0, 8], sizes = [2, 8, 8], strides = [1, 1, 1]} : vector<2x8x32xf32> to vector<2x8x8xf32>
    %33 = vector.extract_strided_slice %28 {offsets = [0, 0, 16], sizes = [2, 8, 8], strides = [1, 1, 1]} : vector<2x8x32xf32> to vector<2x8x8xf32>
    %34 = vector.extract_strided_slice %28 {offsets = [0, 0, 24], sizes = [2, 8, 8], strides = [1, 1, 1]} : vector<2x8x32xf32> to vector<2x8x8xf32>
    %35 = tpu.concatenate %31, %32, %33, %34 in 0 : vector<2x8x8xf32>, vector<2x8x8xf32>, vector<2x8x8xf32>, vector<2x8x8xf32> -> vector<8x8x8xf32>
    %36 = vector.extract_strided_slice %29 {offsets = [0, 0, 0], sizes = [2, 8, 8], strides = [1, 1, 1]} : vector<2x8x32xf32> to vector<2x8x8xf32>
    %37 = vector.extract_strided_slice %29 {offsets = [0, 0, 8], sizes = [2, 8, 8], strides = [1, 1, 1]} : vector<2x8x32xf32> to vector<2x8x8xf32>
    %38 = vector.extract_strided_slice %29 {offsets = [0, 0, 16], sizes = [2, 8, 8], strides = [1, 1, 1]} : vector<2x8x32xf32> to vector<2x8x8xf32>
    %39 = vector.extract_strided_slice %29 {offsets = [0, 0, 24], sizes = [2, 8, 8], strides = [1, 1, 1]} : vector<2x8x32xf32> to vector<2x8x8xf32>
    %40 = tpu.concatenate %36, %37, %38, %39 in 0 : vector<2x8x8xf32>, vector<2x8x8xf32>, vector<2x8x8xf32>, vector<2x8x8xf32> -> vector<8x8x8xf32>
    %41 = vector.extract_strided_slice %30 {offsets = [0, 0, 0], sizes = [2, 8, 8], strides = [1, 1, 1]} : vector<2x8x32xf32> to vector<2x8x8xf32>
    %42 = vector.extract_strided_slice %30 {offsets = [0, 0, 8], sizes = [2, 8, 8], strides = [1, 1, 1]} : vector<2x8x32xf32> to vector<2x8x8xf32>
    %43 = vector.extract_strided_slice %30 {offsets = [0, 0, 16], sizes = [2, 8, 8], strides = [1, 1, 1]} : vector<2x8x32xf32> to vector<2x8x8xf32>
    %44 = vector.extract_strided_slice %30 {offsets = [0, 0, 24], sizes = [2, 8, 8], strides = [1, 1, 1]} : vector<2x8x32xf32> to vector<2x8x8xf32>
    %45 = tpu.concatenate %41, %42, %43, %44 in 0 : vector<2x8x8xf32>, vector<2x8x8xf32>, vector<2x8x8xf32>, vector<2x8x8xf32> -> vector<8x8x8xf32>
    "tpu.trace_start"() <{level = 10 : i32, message = "zqd,zkd->zqk"}> : () -> ()
    %cst_11 = arith.constant dense<0.000000e+00> : vector<8x8x8xf32>
    %46 = tpu.matmul %35, %40, %cst_11 {dimension_numbers = #tpu.dot_dimension_numbers<[2], [2], [1], [1], [0, 0, 0, 1, 1, 1], [0], [0]>} : vector<8x8x8xf32>, vector<8x8x8xf32>, vector<8x8x8xf32> -> vector<8x8x8xf32>
    "tpu.trace_stop"() : () -> ()
    %cst_12 = arith.constant 0.353553385 : f32
    %47 = vector.broadcast %cst_12 : f32 to vector<8x8x8xf32>
    %48 = arith.mulf %46, %47 : vector<8x8x8xf32>
    %cst_13 = arith.constant dense<0xFF800000> : vector<8x8xf32>
    %49 = vector.multi_reduction <maximumf>, %48, %cst_13 [2] : vector<8x8x8xf32> to vector<8x8xf32>
    %50 = vector.shape_cast %49 : vector<8x8xf32> to vector<8x8x1xf32>
    %51 = vector.broadcast %50 : vector<8x8x1xf32> to vector<8x8x8xf32>
    %52 = arith.subf %48, %51 : vector<8x8x8xf32>
    %53 = math.exp %52 : vector<8x8x8xf32>
    %cst_14 = arith.constant dense<0.000000e+00> : vector<8x8xf32>
    %54 = vector.multi_reduction <add>, %53, %cst_14 [2] : vector<8x8x8xf32> to vector<8x8xf32>
    %55 = vector.shape_cast %54 : vector<8x8xf32> to vector<8x8x1xf32>
    %56 = vector.broadcast %55 : vector<8x8x1xf32> to vector<8x8x8xf32>
    %57 = arith.divf %53, %56 : vector<8x8x8xf32>
    "tpu.trace_start"() <{level = 10 : i32, message = "zqk,zkd->zqd"}> : () -> ()
    %cst_15 = arith.constant dense<0.000000e+00> : vector<8x8x8xf32>
    %58 = tpu.matmul %57, %45, %cst_15 {dimension_numbers = #tpu.dot_dimension_numbers<[2], [1], [1], [2], [0, 0, 0, 1, 1, 2], [0], [0]>} : vector<8x8x8xf32>, vector<8x8x8xf32>, vector<8x8x8xf32> -> vector<8x8x8xf32>
    "tpu.trace_stop"() : () -> ()
    %59 = vector.extract_strided_slice %58 {offsets = [0, 0, 0], sizes = [2, 8, 8], strides = [1, 1, 1]} : vector<8x8x8xf32> to vector<2x8x8xf32>
    %60 = vector.shape_cast %59 : vector<2x8x8xf32> to vector<16x8xf32>
    %61 = vector.extract_strided_slice %58 {offsets = [2, 0, 0], sizes = [2, 8, 8], strides = [1, 1, 1]} : vector<8x8x8xf32> to vector<2x8x8xf32>
    %62 = vector.shape_cast %61 : vector<2x8x8xf32> to vector<16x8xf32>
    %63 = vector.extract_strided_slice %58 {offsets = [4, 0, 0], sizes = [2, 8, 8], strides = [1, 1, 1]} : vector<8x8x8xf32> to vector<2x8x8xf32>
    %64 = vector.shape_cast %63 : vector<2x8x8xf32> to vector<16x8xf32>
    %65 = vector.extract_strided_slice %58 {offsets = [6, 0, 0], sizes = [2, 8, 8], strides = [1, 1, 1]} : vector<8x8x8xf32> to vector<2x8x8xf32>
    %66 = vector.shape_cast %65 : vector<2x8x8xf32> to vector<16x8xf32>
    %67 = tpu.concatenate %60, %62, %64, %66 in 1 : vector<16x8xf32>, vector<16x8xf32>, vector<16x8xf32>, vector<16x8xf32> -> vector<16x32xf32>
    %cst_16 = arith.constant dense<0.000000e+00> : vector<16x32xf32>
    %68 = tpu.matmul %67, %4, %cst_16 {dimension_numbers = #tpu.dot_dimension_numbers<[1], [0], [0], [1], [0, 0, 1, 1], [], []>} : vector<16x32xf32>, vector<32x32xf32>, vector<16x32xf32> -> vector<16x32xf32>
    %69 = vector.broadcast %12 : vector<1x32xf32> to vector<16x32xf32>
    %70 = arith.addf %68, %69 : vector<16x32xf32>
    %71 = arith.addf %19, %70 : vector<16x32xf32>
    %72 = vector.extract_strided_slice %16 {offsets = [0, 0], sizes = [1, 32], strides = [1, 1]} : vector<3x32xf32> to vector<1x32xf32>
    %73 = vector.extract_strided_slice %17 {offsets = [0, 0], sizes = [1, 32], strides = [1, 1]} : vector<3x32xf32> to vector<1x32xf32>
    %cst_17 = arith.constant dense<0.000000e+00> : vector<16xf32>
    %74 = vector.multi_reduction <add>, %71, %cst_17 [1] : vector<16x32xf32> to vector<16xf32>
    %75 = vector.shape_cast %74 : vector<16xf32> to vector<16x1xf32>
    %cst_18 = arith.constant 3.200000e+01 : f32
    %76 = vector.broadcast %cst_18 : f32 to vector<16x1xf32>
    %77 = arith.divf %75, %76 : vector<16x1xf32>
    %78 = vector.broadcast %77 : vector<16x1xf32> to vector<16x32xf32>
    %79 = arith.subf %71, %78 : vector<16x32xf32>
    %80 = arith.mulf %79, %79 : vector<16x32xf32>
    %cst_19 = arith.constant dense<0.000000e+00> : vector<16xf32>
    %81 = vector.multi_reduction <add>, %80, %cst_19 [1] : vector<16x32xf32> to vector<16xf32>
    %82 = vector.shape_cast %81 : vector<16xf32> to vector<16x1xf32>
    %cst_20 = arith.constant 3.200000e+01 : f32
    %83 = vector.broadcast %cst_20 : f32 to vector<16x1xf32>
    %84 = arith.divf %82, %83 : vector<16x1xf32>
    %85 = vector.broadcast %77 : vector<16x1xf32> to vector<16x32xf32>
    %86 = arith.subf %71, %85 : vector<16x32xf32>
    %cst_21 = arith.constant 9.99999974E-6 : f32
    %87 = vector.broadcast %cst_21 : f32 to vector<16x1xf32>
    %88 = arith.addf %84, %87 : vector<16x1xf32>
    %89 = math.rsqrt %88 : vector<16x1xf32>
    %90 = vector.broadcast %89 : vector<16x1xf32> to vector<16x32xf32>
    %91 = arith.mulf %86, %90 : vector<16x32xf32>
    %92 = vector.broadcast %72 : vector<1x32xf32> to vector<16x32xf32>
    %93 = arith.mulf %91, %92 : vector<16x32xf32>
    %94 = vector.broadcast %73 : vector<1x32xf32> to vector<16x32xf32>
    %95 = arith.addf %93, %94 : vector<16x32xf32>
    %cst_22 = arith.constant dense<0.000000e+00> : vector<16x32xf32>
    %96 = tpu.matmul %95, %2, %cst_22 {dimension_numbers = #tpu.dot_dimension_numbers<[1], [0], [0], [1], [0, 0, 1, 1], [], []>} : vector<16x32xf32>, vector<32x32xf32>, vector<16x32xf32> -> vector<16x32xf32>
    %97 = vector.broadcast %10 : vector<1x32xf32> to vector<16x32xf32>
    %98 = arith.addf %96, %97 : vector<16x32xf32>
    %cst_23 = arith.constant dense<0.000000e+00> : vector<32x64xf32>
    %99 = tpu.matmul %21, %3, %cst_23 {dimension_numbers = #tpu.dot_dimension_numbers<[1], [0], [0], [1], [0, 0, 1, 1], [], []>} : vector<32x32xf32>, vector<32x64xf32>, vector<32x64xf32> -> vector<32x64xf32>
    %100 = vector.broadcast %11 : vector<1x64xf32> to vector<32x64xf32>
    %101 = arith.addf %99, %100 : vector<32x64xf32>
    %102 = vector.extract_strided_slice %101 {offsets = [0, 0], sizes = [32, 32], strides = [1, 1]} : vector<32x64xf32> to vector<32x32xf32>
    %103 = vector.extract_strided_slice %101 {offsets = [0, 32], sizes = [32, 32], strides = [1, 1]} : vector<32x64xf32> to vector<32x32xf32>
    %104 = vector.shape_cast %98 : vector<16x32xf32> to vector<2x8x32xf32>
    %105 = vector.shape_cast %102 : vector<32x32xf32> to vector<2x16x32xf32>
    %106 = vector.shape_cast %103 : vector<32x32xf32> to vector<2x16x32xf32>
    %107 = vector.extract_strided_slice %104 {offsets = [0, 0, 0], sizes = [2, 8, 8], strides = [1, 1, 1]} : vector<2x8x32xf32> to vector<2x8x8xf32>
    %108 = vector.extract_strided_slice %104 {offsets = [0, 0, 8], sizes = [2, 8, 8], strides = [1, 1, 1]} : vector<2x8x32xf32> to vector<2x8x8xf32>
    %109 = vector.extract_strided_slice %104 {offsets = [0, 0, 16], sizes = [2, 8, 8], strides = [1, 1, 1]} : vector<2x8x32xf32> to vector<2x8x8xf32>
    %110 = vector.extract_strided_slice %104 {offsets = [0, 0, 24], sizes = [2, 8, 8], strides = [1, 1, 1]} : vector<2x8x32xf32> to vector<2x8x8xf32>
    %111 = tpu.concatenate %107, %108, %109, %110 in 0 : vector<2x8x8xf32>, vector<2x8x8xf32>, vector<2x8x8xf32>, vector<2x8x8xf32> -> vector<8x8x8xf32>
    %112 = vector.extract_strided_slice %105 {offsets = [0, 0, 0], sizes = [2, 16, 8], strides = [1, 1, 1]} : vector<2x16x32xf32> to vector<2x16x8xf32>
    %113 = vector.extract_strided_slice %105 {offsets = [0, 0, 8], sizes = [2, 16, 8], strides = [1, 1, 1]} : vector<2x16x32xf32> to vector<2x16x8xf32>
    %114 = vector.extract_strided_slice %105 {offsets = [0, 0, 16], sizes = [2, 16, 8], strides = [1, 1, 1]} : vector<2x16x32xf32> to vector<2x16x8xf32>
    %115 = vector.extract_strided_slice %105 {offsets = [0, 0, 24], sizes = [2, 16, 8], strides = [1, 1, 1]} : vector<2x16x32xf32> to vector<2x16x8xf32>
    %116 = tpu.concatenate %112, %113, %114, %115 in 0 : vector<2x16x8xf32>, vector<2x16x8xf32>, vector<2x16x8xf32>, vector<2x16x8xf32> -> vector<8x16x8xf32>
    %117 = vector.extract_strided_slice %106 {offsets = [0, 0, 0], sizes = [2, 16, 8], strides = [1, 1, 1]} : vector<2x16x32xf32> to vector<2x16x8xf32>
    %118 = vector.extract_strided_slice %106 {offsets = [0, 0, 8], sizes = [2, 16, 8], strides = [1, 1, 1]} : vector<2x16x32xf32> to vector<2x16x8xf32>
    %119 = vector.extract_strided_slice %106 {offsets = [0, 0, 16], sizes = [2, 16, 8], strides = [1, 1, 1]} : vector<2x16x32xf32> to vector<2x16x8xf32>
    %120 = vector.extract_strided_slice %106 {offsets = [0, 0, 24], sizes = [2, 16, 8], strides = [1, 1, 1]} : vector<2x16x32xf32> to vector<2x16x8xf32>
    %121 = tpu.concatenate %117, %118, %119, %120 in 0 : vector<2x16x8xf32>, vector<2x16x8xf32>, vector<2x16x8xf32>, vector<2x16x8xf32> -> vector<8x16x8xf32>
    "tpu.trace_start"() <{level = 10 : i32, message = "zqd,zkd->zqk"}> : () -> ()
    %cst_24 = arith.constant dense<0.000000e+00> : vector<8x8x16xf32>
    %122 = tpu.matmul %111, %116, %cst_24 {dimension_numbers = #tpu.dot_dimension_numbers<[2], [2], [1], [1], [0, 0, 0, 1, 1, 1], [0], [0]>} : vector<8x8x8xf32>, vector<8x16x8xf32>, vector<8x8x16xf32> -> vector<8x8x16xf32>
    "tpu.trace_stop"() : () -> ()
    %cst_25 = arith.constant 0.353553385 : f32
    %123 = vector.broadcast %cst_25 : f32 to vector<8x8x16xf32>
    %124 = arith.mulf %122, %123 : vector<8x8x16xf32>
    %cst_26 = arith.constant dense<0xFF800000> : vector<8x8xf32>
    %125 = vector.multi_reduction <maximumf>, %124, %cst_26 [2] : vector<8x8x16xf32> to vector<8x8xf32>
    %126 = vector.shape_cast %125 : vector<8x8xf32> to vector<8x8x1xf32>
    %127 = vector.broadcast %126 : vector<8x8x1xf32> to vector<8x8x16xf32>
    %128 = arith.subf %124, %127 : vector<8x8x16xf32>
    %129 = math.exp %128 : vector<8x8x16xf32>
    %cst_27 = arith.constant dense<0.000000e+00> : vector<8x8xf32>
    %130 = vector.multi_reduction <add>, %129, %cst_27 [2] : vector<8x8x16xf32> to vector<8x8xf32>
    %131 = vector.shape_cast %130 : vector<8x8xf32> to vector<8x8x1xf32>
    %132 = vector.broadcast %131 : vector<8x8x1xf32> to vector<8x8x16xf32>
    %133 = arith.divf %129, %132 : vector<8x8x16xf32>
    "tpu.trace_start"() <{level = 10 : i32, message = "zqk,zkd->zqd"}> : () -> ()
    %cst_28 = arith.constant dense<0.000000e+00> : vector<8x8x8xf32>
    %134 = tpu.matmul %133, %121, %cst_28 {dimension_numbers = #tpu.dot_dimension_numbers<[2], [1], [1], [2], [0, 0, 0, 1, 1, 2], [0], [0]>} : vector<8x8x16xf32>, vector<8x16x8xf32>, vector<8x8x8xf32> -> vector<8x8x8xf32>
    "tpu.trace_stop"() : () -> ()
    %135 = vector.extract_strided_slice %134 {offsets = [0, 0, 0], sizes = [2, 8, 8], strides = [1, 1, 1]} : vector<8x8x8xf32> to vector<2x8x8xf32>
    %136 = vector.shape_cast %135 : vector<2x8x8xf32> to vector<16x8xf32>
    %137 = vector.extract_strided_slice %134 {offsets = [2, 0, 0], sizes = [2, 8, 8], strides = [1, 1, 1]} : vector<8x8x8xf32> to vector<2x8x8xf32>
    %138 = vector.shape_cast %137 : vector<2x8x8xf32> to vector<16x8xf32>
    %139 = vector.extract_strided_slice %134 {offsets = [4, 0, 0], sizes = [2, 8, 8], strides = [1, 1, 1]} : vector<8x8x8xf32> to vector<2x8x8xf32>
    %140 = vector.shape_cast %139 : vector<2x8x8xf32> to vector<16x8xf32>
    %141 = vector.extract_strided_slice %134 {offsets = [6, 0, 0], sizes = [2, 8, 8], strides = [1, 1, 1]} : vector<8x8x8xf32> to vector<2x8x8xf32>
    %142 = vector.shape_cast %141 : vector<2x8x8xf32> to vector<16x8xf32>
    %143 = tpu.concatenate %136, %138, %140, %142 in 1 : vector<16x8xf32>, vector<16x8xf32>, vector<16x8xf32>, vector<16x8xf32> -> vector<16x32xf32>
    %cst_29 = arith.constant dense<0.000000e+00> : vector<16x32xf32>
    %144 = tpu.matmul %143, %5, %cst_29 {dimension_numbers = #tpu.dot_dimension_numbers<[1], [0], [0], [1], [0, 0, 1, 1], [], []>} : vector<16x32xf32>, vector<32x32xf32>, vector<16x32xf32> -> vector<16x32xf32>
    %145 = vector.broadcast %13 : vector<1x32xf32> to vector<16x32xf32>
    %146 = arith.addf %144, %145 : vector<16x32xf32>
    %147 = arith.addf %95, %146 : vector<16x32xf32>
    %148 = vector.extract_strided_slice %16 {offsets = [1, 0], sizes = [1, 32], strides = [1, 1]} : vector<3x32xf32> to vector<1x32xf32>
    %149 = vector.extract_strided_slice %17 {offsets = [1, 0], sizes = [1, 32], strides = [1, 1]} : vector<3x32xf32> to vector<1x32xf32>
    %cst_30 = arith.constant dense<0.000000e+00> : vector<16xf32>
    %150 = vector.multi_reduction <add>, %147, %cst_30 [1] : vector<16x32xf32> to vector<16xf32>
    %151 = vector.shape_cast %150 : vector<16xf32> to vector<16x1xf32>
    %cst_31 = arith.constant 3.200000e+01 : f32
    %152 = vector.broadcast %cst_31 : f32 to vector<16x1xf32>
    %153 = arith.divf %151, %152 : vector<16x1xf32>
    %154 = vector.broadcast %153 : vector<16x1xf32> to vector<16x32xf32>
    %155 = arith.subf %147, %154 : vector<16x32xf32>
    %156 = arith.mulf %155, %155 : vector<16x32xf32>
    %cst_32 = arith.constant dense<0.000000e+00> : vector<16xf32>
    %157 = vector.multi_reduction <add>, %156, %cst_32 [1] : vector<16x32xf32> to vector<16xf32>
    %158 = vector.shape_cast %157 : vector<16xf32> to vector<16x1xf32>
    %cst_33 = arith.constant 3.200000e+01 : f32
    %159 = vector.broadcast %cst_33 : f32 to vector<16x1xf32>
    %160 = arith.divf %158, %159 : vector<16x1xf32>
    %161 = vector.broadcast %153 : vector<16x1xf32> to vector<16x32xf32>
    %162 = arith.subf %147, %161 : vector<16x32xf32>
    %cst_34 = arith.constant 9.99999974E-6 : f32
    %163 = vector.broadcast %cst_34 : f32 to vector<16x1xf32>
    %164 = arith.addf %160, %163 : vector<16x1xf32>
    %165 = math.rsqrt %164 : vector<16x1xf32>
    %166 = vector.broadcast %165 : vector<16x1xf32> to vector<16x32xf32>
    %167 = arith.mulf %162, %166 : vector<16x32xf32>
    %168 = vector.broadcast %148 : vector<1x32xf32> to vector<16x32xf32>
    %169 = arith.mulf %167, %168 : vector<16x32xf32>
    %170 = vector.broadcast %149 : vector<1x32xf32> to vector<16x32xf32>
    %171 = arith.addf %169, %170 : vector<16x32xf32>
    %cst_35 = arith.constant dense<0.000000e+00> : vector<16x64xf32>
    %172 = tpu.matmul %171, %6, %cst_35 {dimension_numbers = #tpu.dot_dimension_numbers<[1], [0], [0], [1], [0, 0, 1, 1], [], []>} : vector<16x32xf32>, vector<32x64xf32>, vector<16x64xf32> -> vector<16x64xf32>
    %173 = vector.broadcast %14 : vector<1x64xf32> to vector<16x64xf32>
    %174 = arith.addf %172, %173 : vector<16x64xf32>
    %cst_36 = arith.constant 0.000000e+00 : f32
    %175 = vector.broadcast %cst_36 : f32 to vector<16x64xf32>
    %176 = arith.maximumf %174, %175 : vector<16x64xf32>
    %cst_37 = arith.constant dense<0.000000e+00> : vector<16x32xf32>
    %177 = tpu.matmul %176, %7, %cst_37 {dimension_numbers = #tpu.dot_dimension_numbers<[1], [0], [0], [1], [0, 0, 1, 1], [], []>} : vector<16x64xf32>, vector<64x32xf32>, vector<16x32xf32> -> vector<16x32xf32>
    %178 = vector.broadcast %15 : vector<1x32xf32> to vector<16x32xf32>
    %179 = arith.addf %177, %178 : vector<16x32xf32>
    %180 = arith.addf %171, %179 : vector<16x32xf32>
    %181 = vector.extract_strided_slice %16 {offsets = [2, 0], sizes = [1, 32], strides = [1, 1]} : vector<3x32xf32> to vector<1x32xf32>
    %182 = vector.extract_strided_slice %17 {offsets = [2, 0], sizes = [1, 32], strides = [1, 1]} : vector<3x32xf32> to vector<1x32xf32>
    %cst_38 = arith.constant dense<0.000000e+00> : vector<16xf32>
    %183 = vector.multi_reduction <add>, %180, %cst_38 [1] : vector<16x32xf32> to vector<16xf32>
    %184 = vector.shape_cast %183 : vector<16xf32> to vector<16x1xf32>
    %cst_39 = arith.constant 3.200000e+01 : f32
    %185 = vector.broadcast %cst_39 : f32 to vector<16x1xf32>
    %186 = arith.divf %184, %185 : vector<16x1xf32>
    %187 = vector.broadcast %186 : vector<16x1xf32> to vector<16x32xf32>
    %188 = arith.subf %180, %187 : vector<16x32xf32>
    %189 = arith.mulf %188, %188 : vector<16x32xf32>
    %cst_40 = arith.constant dense<0.000000e+00> : vector<16xf32>
    %190 = vector.multi_reduction <add>, %189, %cst_40 [1] : vector<16x32xf32> to vector<16xf32>
    %191 = vector.shape_cast %190 : vector<16xf32> to vector<16x1xf32>
    %cst_41 = arith.constant 3.200000e+01 : f32
    %192 = vector.broadcast %cst_41 : f32 to vector<16x1xf32>
    %193 = arith.divf %191, %192 : vector<16x1xf32>
    %194 = vector.broadcast %186 : vector<16x1xf32> to vector<16x32xf32>
    %195 = arith.subf %180, %194 : vector<16x32xf32>
    %cst_42 = arith.constant 9.99999974E-6 : f32
    %196 = vector.broadcast %cst_42 : f32 to vector<16x1xf32>
    %197 = arith.addf %193, %196 : vector<16x1xf32>
    %198 = math.rsqrt %197 : vector<16x1xf32>
    %199 = vector.broadcast %198 : vector<16x1xf32> to vector<16x32xf32>
    %200 = arith.mulf %195, %199 : vector<16x32xf32>
    %201 = vector.broadcast %181 : vector<1x32xf32> to vector<16x32xf32>
    %202 = arith.mulf %200, %201 : vector<16x32xf32>
    %203 = vector.broadcast %182 : vector<1x32xf32> to vector<16x32xf32>
    %204 = arith.addf %202, %203 : vector<16x32xf32>
    %205 = vector.shape_cast %204 : vector<16x32xf32> to vector<2x8x32xf32>
    %c0_43 = arith.constant 0 : index
    %c0_44 = arith.constant 0 : index
    %c0_45 = arith.constant 0 : index
    %206 = vector.load %arg5[%c0_43, %c0_44, %c0_45] : memref<2x8x32xf32, #tpu.memory_space<vmem>>, vector<2x8x32xf32>
    tpu.vector_store %arg5[%c0_43, %c0_44, %c0_45], %205 {strides = array<i32>} : memref<2x8x32xf32, #tpu.memory_space<vmem>>, vector<2x8x32xf32>,
    return
  }
}

</mosaic_0001>

<bundles_post_ra>
// kernel: decoder_layer.1
= control target key start
LH: loop header
LB: loop body
LE: loop exit
PB: predicated region body
PF: predicated region fallthrough
CT: control target
= control target key end

     0   :  { %vm65_vm0 = vcmask 261120   ;;  %s5022_s0 = inlined_call_operand.vmem [shape: f32[2,8,32], index: 0, kind: input, shape index: {}]   ;;  %s5023_s1 = inlined_call_operand.vmem [shape: f32[2,16,32], index: 1, kind: input, shape index: {}]   ;;  %s5024_s2 = inlined_call_operand.vmem [shape: f32[32,768], index: 2, kind: input, shape index: {}]   ;;  %s5025_s3 = inlined_call_operand.vmem [shape: f32[64,32], index: 3, kind: input, shape index: {}]   ;;  %s5026_s4 = inlined_call_operand.vmem [shape: f32[16,128], index: 4, kind: input, shape index: {}]   ;;  %s5027_s5 = inlined_call_operand.hbm [shape: f32[2,8,32], index: 5, kind: output, shape index: {}]  }
   0x1   :  { %v21_v0 = vld [vmem:[%s5024_s2] sm:$0xff]  ;;  %v27_v1 = vld [vmem:[%s5024_s2 + $0x30] sm:$0xff] }
   0x2   :  { %v33_v2 = vld [vmem:[%s5024_s2 + $0x60] sm:$0xff]  ;;  %v4062_v3 = vpack.c.bf16 %v27_v1, %v21_v0  ;;  %v39_v4 = vld [vmem:[%s5024_s2 + $0x90] sm:$0xff] }
   0x3   :  { %v4424_v5 = vld [vmem:[%s5022_s0] sm:$0xff]  ;;  %v4066_v6 = vpack.c.bf16 %v39_v4, %v33_v2 }
   0x4   :  { %3790 = vmatprep.mubr.msk.f32.mxu1 %vm65_vm0, %v4424_v5 }
   0x5   :  { %10 = vsyncpa [#allocation3], 0  ;;  %4063 = vmatprep.subr.bf16.mxu1 %v4062_v3  ;;  %v4431_v7 = vld [vmem:[%s5022_s0 + $0x8] sm:$0xff]  ;;  %v61_v8 = vlaneseq  ;;  %v4441_v11 = vld [vmem:[%s5026_s4] sm:$0xff]  ;;  %v4366_v14 = vmov 0.0   ;;  %s4367_s0 = smov 112  }
   0x6   :  { %4065 = vmatpush3.bf16.msra.mxu1 %v4062_v3  ;;  %3803 = vmatprep.subr.mxu0 %v4366_v14  ;;  %s4368_s7 = smov 120   ;;  %vm4369_vm1 = vmmov 0   ;;  %s4370_s8 = smov 104   ;;  %vm163_vm2 = vcmask 64512   ;;  %vm1500_vm3 = vcmask 130048   ;;  %vm1503_vm4 = vcmask 195584  }
   0x7   :  { %4067 = vmatprep.subr.bf16.mxu1 %v4066_v6  ;;  %v4435_v9 = vshrl.u32 %v61_v8, 7  ;;  %3805 = vmatprep.mubr.msk.f32.mxu0 %vm4369_vm1, %v4366_v14  ;;  %s4371_s9 = smov 96   ;;  %s4372_s10 = smov 64   ;;  %vm4716_vm5 = vmpackc.low %vm163_vm2, %vm163_vm2  ;;  %vm3442_vm6 = vcmask 523264  }
   0x8   :  { %s4373_s19 = smov 8   ;;  %s4374_s20 = smov 16  }
   0x9   :  { %v63_v10 = vsub.s32 0, %v4435_v9  ;;  %s4375_s21 = smov 24  }
   0xa   :  { %4069 = vmatpush3.bf16.msra.mxu1 %v4066_v6 }
   0xb   :  { %v64_v12 = vrot.slane %v4441_v11, %v63_v10  ;;  %3793 = vmatprep.subr.mxu1 %v4366_v14 }
   0xd   :  { %3791 = vmatmul.mubr.msk.f32.vlgmr.msra.gmra.mrb[0].mxu1 %vm65_vm0, %v4431_v7 }
   0xe   :  { %3795 = vmatprep.mubr.msk.f32.mxu1 %vm4369_vm1, %v4366_v14 }
  0xe0   :  { %v3792_v13 = vpop.f32.mrb[0].mxu1 }
  0xe1   :  { %v138_v15 = vpop.f32.mrb[1].mxu1  ;;  %v4458_v17 = vadd.f32 %v3792_v13, %v64_v12 }
  0xe2   :  { %v4448_v16 = vadd.f32 %v138_v15, %v64_v12 }
  0xe4   :  { %153 = vrot.lane.b32.xlu1 %v4448_v16, %s4367_s0  ;;  %149 = vrot.lane.b32.xlu0 %v4448_v16, %s4368_s7 }
  0xe8   :  { %155 = vrot.lane.b32.xlu1 %v4458_v17, %s4367_s0  ;;  %151 = vrot.lane.b32.xlu0 %v4458_v17, %s4368_s7 }
  0xec   :  { %159 = vrot.lane.b32.xlu1 %v4458_v17, %s4370_s8  ;;  %157 = vrot.lane.b32.xlu0 %v4448_v16, %s4370_s8 }
  0xf0   :  { %238 = vrot.lane.b32.xlu1 %v4458_v17, %s4371_s9  ;;  %161 = vrot.lane.b32.xlu0 %v4448_v16, %s4371_s9 }
 0x156   :  { %v4472_v18 = vpop.permute.xlu1 %153  ;;  %v4474_v19 = vpop.permute.xlu0 %149 }
 0x157   :  { %314 = vrot.lane.b32.xlu0 %v4474_v19, %s4371_s9 }
 0x15a   :  { %v4478_v20 = vpop.permute.xlu1 %155  ;;  %v4480_v21 = vpop.permute.xlu0 %151 }
 0x15b   :  { %466 = vrot.lane.b32.xlu0 %v4472_v18, %s4371_s9  ;;  %390 = vrot.lane.b32.xlu1 %v4480_v21, %s4371_s9 }
 0x15e   :  { %v4486_v22 = vpop.permute.xlu0 %157  ;;  %v4492_v23 = vpop.permute.xlu1 %159 }
 0x15f   :  { %542 = vrot.lane.b32.xlu1 %v4478_v20, %s4371_s9  ;;  %618 = vrot.lane.b32.xlu0 %v4486_v22, %s4371_s9 }
 0x162   :  { %v162_v24 = vpop.permute.xlu0 %161  ;;  %v239_v25 = vpop.permute.xlu1 %238 }
 0x163   :  { %694 = vrot.lane.b32.xlu1 %v4492_v23, %s4371_s9  ;;  %3794 = vmatpush3.xpose.msk.msra.mxu1 %vm163_vm2, %v162_v24 }
 0x164   :  { %3798 = vmatprep.subr.mxu1 %v4366_v14 }
 0x166   :  { %3796 = vmatmul.mubr.msk.f32.vlgmr.msra.gmra.mrb[2].mxu1 %vm163_vm2, %v4448_v16 }
 0x167   :  { %3799 = vmatpush3.xpose.msk.msra.mxu1 %vm163_vm2, %v239_v25  ;;  %3800 = vmatprep.mubr.msk.f32.mxu1 %vm4369_vm1, %v4366_v14 }
 0x168   :  { %3808 = vmatprep.subr.mxu1 %v4366_v14 }
 0x16a   :  { %3801 = vmatmul.mubr.msk.f32.vlgmr.msra.gmra.mrb[4].mxu1 %vm163_vm2, %v4458_v17 }
 0x16b   :  { %3810 = vmatprep.mubr.msk.f32.mxu1 %vm4369_vm1, %v4366_v14 }
 0x1c9   :  { %v315_v26 = vpop.permute.xlu0 %314 }
 0x1ca   :  { %3804 = vmatpush3.xpose.msk.msra.mxu0 %vm163_vm2, %v315_v26 }
 0x1cb   :  { %3813 = vmatprep.subr.mxu0 %v4366_v14 }
 0x1cd   :  { %v391_v27 = vpop.permute.xlu1 %390  ;;  %3806 = vmatmul.mubr.msk.f32.vlgmr.msra.gmra.mrb[0].mxu0 %vm163_vm2, %v4474_v19  ;;  %v467_v28 = vpop.permute.xlu0 %466 }
 0x1ce   :  { %3809 = vmatpush3.xpose.msk.msra.mxu1 %vm163_vm2, %v391_v27  ;;  %3814 = vmatpush3.xpose.msk.msra.mxu0 %vm163_vm2, %v467_v28 }
 0x1cf   :  { %3815 = vmatprep.mubr.msk.f32.mxu0 %vm4369_vm1, %v4366_v14  ;;  %3818 = vmatprep.subr.mxu1 %v4366_v14 }
 0x1d0   :  { %3823 = vmatprep.subr.mxu0 %v4366_v14 }
 0x1d1   :  { %v543_v29 = vpop.permute.xlu1 %542  ;;  %3811 = vmatmul.mubr.msk.f32.vlgmr.msra.gmra.mrb[6].mxu1 %vm163_vm2, %v4480_v21  ;;  %3816 = vmatmul.mubr.msk.f32.vlgmr.msra.gmra.mrb[2].mxu0 %vm163_vm2, %v4472_v18  ;;  %v619_v30 = vpop.permute.xlu0 %618 }
 0x1d2   :  { %3819 = vmatpush3.xpose.msk.msra.mxu1 %vm163_vm2, %v543_v29  ;;  %3824 = vmatpush3.xpose.msk.msra.mxu0 %vm163_vm2, %v619_v30 }
 0x1d3   :  { %3820 = vmatprep.mubr.msk.f32.mxu1 %vm4369_vm1, %v4366_v14  ;;  %3825 = vmatprep.mubr.msk.f32.mxu0 %vm4369_vm1, %v4366_v14 }
 0x1d4   :  { %3828 = vmatprep.subr.mxu1 %v4366_v14  ;;  %3833 = vmatprep.subr.mxu0 %v4366_v14 }
 0x1d5   :  { %v695_v31 = vpop.permute.xlu1 %694  ;;  %3821 = vmatmul.mubr.msk.f32.vlgmr.msra.gmra.mrb[8].mxu1 %vm163_vm2, %v4478_v20  ;;  %3826 = vmatmul.mubr.msk.f32.vlgmr.msra.gmra.mrb[4].mxu0 %vm163_vm2, %v4486_v22 }
 0x1d6   :  { %3829 = vmatpush3.xpose.msk.msra.mxu1 %vm163_vm2, %v695_v31  ;;  %3830 = vmatprep.mubr.msk.f32.mxu1 %vm4369_vm1, %v4366_v14 }
 0x1d7   :  { %3838 = vmatprep.subr.mxu1 %v4366_v14  ;;  %3835 = vmatprep.mubr.msk.f32.mxu0 %vm4369_vm1, %v4366_v14 }
 0x1d9   :  { %3831 = vmatmul.mubr.msk.f32.vlgmr.msra.gmra.mrb[10].mxu1 %vm163_vm2, %v4492_v23 }
 0x1da   :  { %3840 = vmatprep.mubr.msk.f32.mxu1 %vm4369_vm1, %v4366_v14 }
 0x239   :  { %v234_v32 = vpop.f32.mrb[2].mxu1 }
 0x23a   :  { %v770_v33 = vmul.f32 0.35355338, %v234_v32  ;;  %v3797_v34 = vpop.f32.mrb[3].mxu1 }
 0x23c   :  { %v778_v35 = vsel %vm163_vm2, %v770_v33, -inf }
 0x23d   :  { %779 = vmax.xlane.f32.xlu0 %v778_v35  ;;  %v310_v36 = vpop.f32.mrb[4].mxu1 }
 0x23e   :  { %v771_v37 = vmul.f32 0.35355338, %v310_v36  ;;  %v3802_v38 = vpop.f32.mrb[5].mxu1 }
 0x240   :  { %v781_v39 = vsel %vm163_vm2, %v771_v37, -inf }
 0x241   :  { %782 = vmax.xlane.f32.xlu1 %v781_v39 }
 0x2a0   :  { %v386_v40 = vpop.f32.mrb[0].mxu0 }
 0x2a1   :  { %v772_v41 = vmul.f32 0.35355338, %v386_v40  ;;  %v3807_v42 = vpop.f32.mrb[1].mxu0 }
 0x2a3   :  { %v784_v43 = vsel %vm163_vm2, %v772_v41, -inf }
 0x2a4   :  { %v462_v44 = vpop.f32.mrb[6].mxu1  ;;  %785 = vmax.xlane.f32.xlu0 %v784_v43  ;;  %v538_v45 = vpop.f32.mrb[2].mxu0 }
 0x2a5   :  { %v773_v46 = vmul.f32 0.35355338, %v462_v44  ;;  %v774_v47 = vmul.f32 0.35355338, %v538_v45  ;;  %v3812_v48 = vpop.f32.mrb[7].mxu1  ;;  %v3817_v49 = vpop.f32.mrb[3].mxu0 }
 0x2a7   :  { %v787_v50 = vsel %vm163_vm2, %v773_v46, -inf  ;;  %v790_v51 = vsel %vm163_vm2, %v774_v47, -inf }
 0x2a8   :  { %v614_v52 = vpop.f32.mrb[8].mxu1  ;;  %788 = vmax.xlane.f32.xlu0 %v787_v50  ;;  %791 = vmax.xlane.f32.xlu1 %v790_v51  ;;  %v690_v53 = vpop.f32.mrb[4].mxu0 }
 0x2a9   :  { %v775_v54 = vmul.f32 0.35355338, %v614_v52  ;;  %v776_v55 = vmul.f32 0.35355338, %v690_v53  ;;  %v3822_v56 = vpop.f32.mrb[9].mxu1  ;;  %v3827_v57 = vpop.f32.mrb[5].mxu0 }
 0x2ab   :  { %v793_v58 = vsel %vm163_vm2, %v775_v54, -inf  ;;  %v796_v59 = vsel %vm163_vm2, %v776_v55, -inf }
 0x2ac   :  { %v766_v60 = vpop.f32.mrb[10].mxu1  ;;  %794 = vmax.xlane.f32.xlu0 %v793_v58  ;;  %797 = vmax.xlane.f32.xlu1 %v796_v59 }
 0x2ad   :  { %v777_v61 = vmul.f32 0.35355338, %v766_v60  ;;  %v3832_v62 = vpop.f32.mrb[11].mxu1 }
 0x2af   :  { %v799_v63 = vsel %vm163_vm2, %v777_v61, -inf }
 0x2b0   :  { %800 = vmax.xlane.f32.xlu0 %v799_v63 }
 0x2bd   :  { %866 = vrot.lane.b32.xlu1 %v4448_v16, %s4372_s10 }
 0x2c1   :  { %1018 = vrot.lane.b32.xlu1 %v4474_v19, %s4372_s10 }
 0x2c5   :  { %1094 = vrot.lane.b32.xlu1 %v4480_v21, %s4372_s10 }
 0x2c6   :  { %942 = vrot.lane.b32.xlu0 %v4458_v17, %s4372_s10 }
 0x2c9   :  { %1246 = vrot.lane.b32.xlu1 %v4478_v20, %s4372_s10 }
 0x2ca   :  { %1170 = vrot.lane.b32.xlu0 %v4472_v18, %s4372_s10  ;;  %v780_v2 = vpop.xlane.xlu0 %779 }
 0x2cb   :  { %v802_v3 = vsub.f32 %v770_v33, %v780_v2 }
 0x2cd   :  { %v810_v6 = vmul.f32 1.442695, %v802_v3 }
 0x2ce   :  { %v783_v0 = vpop.xlane.xlu1 %782 }
 0x2cf   :  { %v803_v1 = vsub.f32 %v771_v37, %v783_v0 }
 0x2d1   :  { %v812_v4 = vmul.f32 1.442695, %v803_v1 }
 0x2d3   :  { %4265 = vpow2.f32 %v812_v4 }
 0x2d4   :  { %4267 = vpow2.f32 %v810_v6 }
 0x2dd   :  { %v4564_v8 = vpop.eup %4265 }
 0x2de   :  { %v829_v12 = vsel %vm163_vm2, %v4564_v8, 0.0  ;;  %v4568_v13 = vpop.eup %4267 }
 0x2df   :  { %v826_v15 = vsel %vm163_vm2, %v4568_v13, 0.0 }
 0x2e9   :  { %830 = vadd.xlane.f32.xlu0 %v829_v12 }
 0x2ed   :  { %827 = vadd.xlane.f32.xlu1 %v826_v15 }
 0x331   :  { %v786_v16 = vpop.xlane.xlu0 %785 }
 0x332   :  { %v804_v17 = vsub.f32 %v772_v41, %v786_v16 }
 0x334   :  { %v814_v18 = vmul.f32 1.442695, %v804_v17 }
 0x335   :  { %v792_v19 = vpop.xlane.xlu1 %791  ;;  %v789_v20 = vpop.xlane.xlu0 %788 }
 0x336   :  { %4269 = vpow2.f32 %v814_v18  ;;  %v806_v21 = vsub.f32 %v774_v47, %v792_v19  ;;  %v805_v24 = vsub.f32 %v773_v46, %v789_v20 }
 0x338   :  { %v818_v25 = vmul.f32 1.442695, %v806_v21  ;;  %v816_v26 = vmul.f32 1.442695, %v805_v24 }
 0x339   :  { %v798_v27 = vpop.xlane.xlu1 %797  ;;  %v795_v28 = vpop.xlane.xlu0 %794 }
 0x33a   :  { %4271 = vpow2.f32 %v818_v25  ;;  %v808_v29 = vsub.f32 %v776_v55, %v798_v27  ;;  %v807_v30 = vsub.f32 %v775_v54, %v795_v28  ;;  %v30_v27 = vld [vmem:[%s5024_s2 + $0x48] sm:$0xff] }
 0x33b   :  { %4273 = vpow2.f32 %v816_v26  ;;  %v24_v26 = vld [vmem:[%s5024_s2 + $0x18] sm:$0xff] }
 0x33c   :  { %v822_v31 = vmul.f32 1.442695, %v808_v29  ;;  %v820_v32 = vmul.f32 1.442695, %v807_v30  ;;  %v4070_v28 = vpack.c.bf16 %v30_v27, %v24_v26  ;;  %v36_v29 = vld [vmem:[%s5024_s2 + $0x78] sm:$0xff]  ;;  %v42_v30 = vld [vmem:[%s5024_s2 + $0xa8] sm:$0xff] }
 0x33d   :  { %v867_v33 = vpop.permute.xlu1 %866  ;;  %v801_v34 = vpop.xlane.xlu0 %800  ;;  %v22_v26 = vld [vmem:[%s5024_s2 + $0x8] sm:$0xff]  ;;  %v28_v27 = vld [vmem:[%s5024_s2 + $0x38] sm:$0xff] }
 0x33e   :  { %4275 = vpow2.f32 %v822_v31  ;;  %v809_v35 = vsub.f32 %v777_v61, %v801_v34  ;;  %3834 = vmatpush3.msra.mxu0 %v867_v33  ;;  %v4074_v31 = vpack.c.bf16 %v42_v30, %v36_v29  ;;  %v34_v29 = vld [vmem:[%s5024_s2 + $0x68] sm:$0xff]  ;;  %v40_v30 = vld [vmem:[%s5024_s2 + $0x98] sm:$0xff] }
 0x33f   :  { %4277 = vpow2.f32 %v820_v32  ;;  %3843 = vmatprep.subr.mxu0 %v4366_v14 }
 0x340   :  { %v4270_v36 = vpop.eup %4269  ;;  %v824_v37 = vmul.f32 1.442695, %v809_v35 }
 0x341   :  { %v943_v38 = vpop.permute.xlu0 %942  ;;  %v832_v39 = vsel %vm163_vm2, %v4270_v36, 0.0  ;;  %v1019_v50 = vpop.permute.xlu1 %1018 }
 0x342   :  { %4279 = vpow2.f32 %v824_v37  ;;  %833 = vadd.xlane.f32.xlu1 %v832_v39  ;;  %3839 = vmatpush3.msra.mxu1 %v943_v38 }
 0x343   :  { %3848 = vmatprep.subr.mxu1 %v4366_v14 }
 0x344   :  { %v4272_v40 = vpop.eup %4271 }
 0x345   :  { %v4274_v41 = vpop.eup %4273  ;;  %v838_v42 = vsel %vm163_vm2, %v4272_v40, 0.0  ;;  %v1095_v51 = vpop.permute.xlu1 %1094 }
 0x346   :  { %839 = vadd.xlane.f32.xlu1 %v838_v42  ;;  %v835_v43 = vsel %vm163_vm2, %v4274_v41, 0.0  ;;  %v1171_v52 = vpop.permute.xlu0 %1170 }
 0x347   :  { %836 = vadd.xlane.f32.xlu0 %v835_v43 }
 0x348   :  { %v4276_v44 = vpop.eup %4275 }
 0x349   :  { %v4278_v45 = vpop.eup %4277  ;;  %v844_v46 = vsel %vm163_vm2, %v4276_v44, 0.0  ;;  %v1247_v53 = vpop.permute.xlu1 %1246 }
 0x34a   :  { %845 = vadd.xlane.f32.xlu1 %v844_v46  ;;  %v841_v47 = vsel %vm163_vm2, %v4278_v45, 0.0 }
 0x34b   :  { %842 = vadd.xlane.f32.xlu0 %v841_v47 }
 0x34c   :  { %v4579_v48 = vpop.eup %4279 }
 0x34d   :  { %v847_v49 = vsel %vm163_vm2, %v4579_v48, 0.0 }
 0x34f   :  { %848 = vadd.xlane.f32.xlu0 %v847_v49 }
 0x35b   :  { %1398 = vrot.lane.b32.xlu1 %v4492_v23, %s4372_s10 }
 0x365   :  { %1322 = vrot.lane.b32.xlu0 %v4486_v22, %s4372_s10 }
 0x376   :  { %v831_v54 = vpop.xlane.xlu0 %830 }
 0x377   :  { %4281 = vrcp.f32 %v831_v54 }
 0x37a   :  { %v828_v55 = vpop.xlane.xlu1 %827 }
 0x37b   :  { %4283 = vrcp.f32 %v828_v55 }
 0x381   :  { %v4282_v56 = vpop.eup %4281 }
 0x382   :  { %v853_v57 = vmul.f32 %v4282_v56, %v4564_v8  ;;  %v1508_v56 = vsub.s32 3, %v4435_v9 }
 0x384   :  { %3841 = vmatmul.mubr.msk.f32.vlgmr.msra.gmra.mrb[12].mxu1 %vm163_vm2, %v853_v57  ;;  %v1509_v57 = vrot.slane %v4441_v11, %v1508_v56 }
 0x385   :  { %v4284_v58 = vpop.eup %4283  ;;  %3849 = vmatpush3.msra.mxu1 %v1095_v51  ;;  %3850 = vmatprep.mubr.msk.f32.mxu1 %vm4369_vm1, %v4366_v14 }
 0x386   :  { %v851_v22 = vmul.f32 %v4284_v58, %v4568_v13  ;;  %3858 = vmatprep.subr.mxu1 %v4366_v14 }
 0x388   :  { %3836 = vmatmul.mubr.msk.f32.vlgmr.msra.gmra.mrb[6].mxu0 %vm163_vm2, %v851_v22 }
 0x389   :  { %3844 = vmatpush3.msra.mxu0 %v1019_v50  ;;  %3845 = vmatprep.mubr.msk.f32.mxu0 %vm4369_vm1, %v4366_v14 }
 0x38a   :  { %3853 = vmatprep.subr.mxu0 %v4366_v14 }
 0x3cf   :  { %v834_v23 = vpop.xlane.xlu1 %833 }
 0x3d0   :  { %4285 = vrcp.f32 %v834_v23 }
 0x3d3   :  { %v840_v59 = vpop.xlane.xlu1 %839 }
 0x3d4   :  { %4287 = vrcp.f32 %v840_v59  ;;  %v837_v60 = vpop.xlane.xlu0 %836 }
 0x3d5   :  { %4289 = vrcp.f32 %v837_v60 }
 0x3d7   :  { %v846_v61 = vpop.xlane.xlu1 %845 }
 0x3d8   :  { %4291 = vrcp.f32 %v846_v61  ;;  %v843_v62 = vpop.xlane.xlu0 %842 }
 0x3d9   :  { %4293 = vrcp.f32 %v843_v62 }
 0x3da   :  { %v4286_v63 = vpop.eup %4285 }
 0x3db   :  { %v855_v0 = vmul.f32 %v4286_v63, %v4270_v36  ;;  %v1399_v17 = vpop.permute.xlu1 %1398 }
 0x3dc   :  { %v849_v1 = vpop.xlane.xlu0 %848 }
 0x3dd   :  { %4295 = vrcp.f32 %v849_v1  ;;  %3846 = vmatmul.mubr.msk.f32.vlgmr.msra.gmra.mrb[8].mxu0 %vm163_vm2, %v855_v0  ;;  %v23_v0 = vld [vmem:[%s5024_s2 + $0x10] sm:$0xff]  ;;  %v29_v1 = vld [vmem:[%s5024_s2 + $0x40] sm:$0xff] }
 0x3de   :  { %v4288_v2 = vpop.eup %4287  ;;  %3854 = vmatpush3.msra.mxu0 %v1171_v52  ;;  %3855 = vmatprep.mubr.msk.f32.mxu0 %vm4369_vm1, %v4366_v14 }
 0x3df   :  { %v4290_v3 = vpop.eup %4289  ;;  %v859_v4 = vmul.f32 %v4288_v2, %v4272_v40  ;;  %3863 = vmatprep.subr.mxu0 %v4366_v14  ;;  %v4086_v2 = vpack.c.bf16 %v29_v1, %v23_v0 }
 0x3e0   :  { %v857_v6 = vmul.f32 %v4290_v3, %v4274_v41  ;;  %v1323_v8 = vpop.permute.xlu0 %1322 }
 0x3e1   :  { %3856 = vmatmul.mubr.msk.f32.vlgmr.msra.gmra.mrb[10].mxu0 %vm163_vm2, %v859_v4 }
 0x3e2   :  { %v4292_v12 = vpop.eup %4291  ;;  %3851 = vmatmul.mubr.msk.f32.vlgmr.msra.gmra.mrb[14].mxu1 %vm163_vm2, %v857_v6  ;;  %3864 = vmatpush3.msra.mxu0 %v1323_v8 }
 0x3e3   :  { %v4294_v13 = vpop.eup %4293  ;;  %v863_v15 = vmul.f32 %v4292_v12, %v4276_v44  ;;  %3859 = vmatpush3.msra.mxu1 %v1247_v53  ;;  %3860 = vmatprep.mubr.msk.f32.mxu1 %vm4369_vm1, %v4366_v14 }
 0x3e4   :  { %v861_v16 = vmul.f32 %v4294_v13, %v4278_v45  ;;  %3865 = vmatprep.mubr.msk.f32.mxu0 %vm4369_vm1, %v4366_v14  ;;  %3868 = vmatprep.subr.mxu1 %v4366_v14 }
 0x3e5   :  { %3866 = vmatmul.mubr.msk.f32.vlgmr.msra.gmra.mrb[12].mxu0 %vm163_vm2, %v863_v15  ;;  %4071 = vmatprep.subr.bf16.mxu0 %v4070_v28 }
 0x3e6   :  { %3861 = vmatmul.mubr.msk.f32.vlgmr.msra.gmra.mrb[16].mxu1 %vm163_vm2, %v861_v16  ;;  %4073 = vmatpush3.bf16.msra.mxu0 %v4070_v28  ;;  %v4078_v28 = vpack.c.bf16 %v28_v27, %v22_v26 }
 0x3e7   :  { %v4296_v18 = vpop.eup %4295  ;;  %3869 = vmatpush3.msra.mxu1 %v1399_v17  ;;  %3870 = vmatprep.mubr.msk.f32.mxu1 %vm4369_vm1, %v4366_v14  ;;  %v35_v17 = vld [vmem:[%s5024_s2 + $0x70] sm:$0xff] }
 0x3e8   :  { %v865_v19 = vmul.f32 %v4296_v18, %v4579_v48  ;;  %4075 = vmatprep.subr.bf16.mxu0 %v4074_v31  ;;  %v41_v18 = vld [vmem:[%s5024_s2 + $0xa0] sm:$0xff]  ;;  %4079 = vmatprep.subr.bf16.mxu1 %v4078_v28 }
 0x3ea   :  { %3871 = vmatmul.mubr.msk.f32.vlgmr.msra.gmra.mrb[18].mxu1 %vm163_vm2, %v865_v19  ;;  %4077 = vmatpush3.bf16.msra.mxu0 %v4074_v31  ;;  %v4090_v19 = vpack.c.bf16 %v41_v18, %v35_v17  ;;  %v4082_v31 = vpack.c.bf16 %v40_v30, %v34_v29  ;;  %v1634_v17 = vsub.s32 1, %v4435_v9 }
 0x3eb   :  { %4087 = vmatprep.subr.bf16.mxu0 %v4086_v2  ;;  %4081 = vmatpush3.bf16.msra.mxu1 %v4078_v28 }
 0x3ec   :  { %4083 = vmatprep.subr.bf16.mxu1 %v4082_v31  ;;  %v1635_v18 = vrot.slane %v4441_v11, %v1634_v17 }
 0x3ef   :  { %4085 = vmatpush3.bf16.msra.mxu1 %v4082_v31 }
 0x457   :  { %v1014_v20 = vpop.f32.mrb[12].mxu1 }
 0x458   :  { %v3842_v21 = vpop.f32.mrb[13].mxu1 }
 0x459   :  { %v58_v21 = vld [vmem:[%s5023_s1 + $0x8] sm:$0xff] }
 0x45b   :  { %v938_v24 = vpop.f32.mrb[6].mxu0 }
 0x45c   :  { %v3837_v25 = vpop.f32.mrb[7].mxu0 }
 0x45d   :  { %v60_v25 = vld [vmem:[%s5023_s1 + $0x18] sm:$0xff] }
 0x4b0   :  { %v1090_v32 = vpop.f32.mrb[8].mxu0 }
 0x4b1   :  { %v3847_v33 = vpop.f32.mrb[9].mxu0  ;;  %1476 = vrot.lane.b32.xlu0 %v1090_v32, %s4373_s19  ;;  %v4376_v32 = vmov 0.0|0.0  }
 0x4b2   :  { %4094 = vmatprep.subr.bf16.mxu1 %v4376_v32 }
 0x4b4   :  { %v1242_v34 = vpop.f32.mrb[10].mxu0 }
 0x4b5   :  { %v1166_v35 = vpop.f32.mrb[14].mxu1  ;;  %1484 = vrot.lane.b32.xlu0 %v1242_v34, %s4374_s20  ;;  %v3857_v36 = vpop.f32.mrb[11].mxu0 }
 0x4b6   :  { %1478 = vrot.lane.b32.xlu1 %v1166_v35, %s4373_s19  ;;  %v3852_v37 = vpop.f32.mrb[15].mxu1 }
 0x4b8   :  { %v1394_v38 = vpop.f32.mrb[12].mxu0 }
 0x4b9   :  { %v1318_v39 = vpop.f32.mrb[16].mxu1  ;;  %1492 = vrot.lane.b32.xlu0 %v1394_v38, %s4375_s21  ;;  %v3867_v40 = vpop.f32.mrb[13].mxu0 }
 0x4ba   :  { %1486 = vrot.lane.b32.xlu1 %v1318_v39, %s4374_s20  ;;  %v3862_v41 = vpop.f32.mrb[17].mxu1  ;;  %v1622_v39 = vsub.s32 7, %v4435_v9  ;;  %v1628_v40 = vsub.s32 2, %v4435_v9 }
 0x4bb   :  { %v4699_v41 = vld [vmem:[%s5026_s4 + $0x8] sm:$0xff] }
 0x4bd   :  { %v1470_v42 = vpop.f32.mrb[18].mxu1 }
 0x4be   :  { %1494 = vrot.lane.b32.xlu1 %v1470_v42, %s4375_s21  ;;  %v3872_v43 = vpop.f32.mrb[19].mxu1  ;;  %v1623_v42 = vrot.slane %v4441_v11, %v1622_v39 }
 0x523   :  { %v1477_v44 = vpop.permute.xlu0 %1476 }
 0x524   :  { %v1498_v47 = vsel %vm163_vm2, %v938_v24, %v1477_v44  ;;  %v59_v24 = vld [vmem:[%s5023_s1 + $0x10] sm:$0xff] }
 0x527   :  { %v1485_v45 = vpop.permute.xlu0 %1484 }
 0x528   :  { %v1479_v46 = vpop.permute.xlu1 %1478  ;;  %v1501_v48 = vsel %vm1500_vm3, %v1498_v47, %v1485_v45  ;;  %v1629_v45 = vrot.slane %v4699_v41, %v1628_v40 }
 0x529   :  { %v1499_v52 = vsel %vm163_vm2, %v1014_v20, %v1479_v46  ;;  %v57_v20 = vld [vmem:[%s5023_s1] sm:$0xff] }
 0x52b   :  { %v1493_v49 = vpop.permute.xlu0 %1492 }
 0x52c   :  { %v1487_v50 = vpop.permute.xlu1 %1486  ;;  %v1504_v51 = vsel %vm1503_vm4, %v1501_v48, %v1493_v49 }
 0x52d   :  { %3881 = vmatprep.mubr.msk.f32.mxu0 %vm65_vm0, %v1504_v51  ;;  %v1502_v53 = vsel %vm1500_vm3, %v1499_v52, %v1487_v50  ;;  %v1720_v52 = vrot.slane %v4441_v11, %v1628_v40 }
 0x530   :  { %v1495_v54 = vpop.permute.xlu1 %1494 }
 0x531   :  { %v1505_v55 = vsel %vm1503_vm4, %v1502_v53, %v1495_v54 }
 0x532   :  { %3882 = vmatmul.mubr.msk.f32.vlgmr.msra.gmra.mrb[14].mxu0 %vm65_vm0, %v1505_v55 }
 0x533   :  { %4089 = vmatpush3.bf16.msra.mxu0 %v4086_v2  ;;  %3903 = vmatprep.mubr.msk.f32.mxu0 %vm65_vm0, %v57_v20 }
 0x534   :  { %4091 = vmatprep.subr.bf16.mxu0 %v4090_v19 }
 0x537   :  { %4093 = vmatpush3.bf16.msra.mxu0 %v4090_v19 }
 0x538   :  { %4098 = vmatprep.subr.bf16.mxu0 %v4376_v32 }
 0x53a   :  { %3904 = vmatmul.mubr.msk.f32.vlgmr.msra.gmra.mrb[16].mxu0 %vm65_vm0, %v58_v21 }
 0x53b   :  { %3906 = vmatprep.mubr.msk.f32.mxu0 %vm65_vm0, %v59_v24 }
 0x53e   :  { %3907 = vmatmul.mubr.msk.f32.gmra.mrb[18].mxu0 %vm65_vm0, %v60_v25 }
 0x53f   :  { %3920 = vmatprep.mubr.msk.f32.mxu0 %vm4369_vm1, %v4366_v14 }
 0x605   :  { %v3883_v58 = vpop.f32.mrb[14].mxu0 }
 0x606   :  { %v1588_v22 = vadd.f32 %v3883_v58, %v1509_v57  ;;  %v1582_v23 = vpop.f32.mrb[15].mxu0 }
 0x607   :  { %v1583_v59 = vadd.f32 %v1582_v23, %v1509_v57 }
 0x608   :  { %v1592_v60 = vadd.f32 %v1588_v22, %v4431_v7 }
 0x609   :  { %v1591_v61 = vadd.f32 %v1583_v59, %v4424_v5 }
 0x60a   :  { %v1596_v62 = vsel %vm65_vm0, %v1592_v60, 0.0 }
 0x60b   :  { %1597 = vadd.xlane.f32.xlu1 %v1596_v62  ;;  %v1593_v63 = vsel %vm65_vm0, %v1591_v61, 0.0 }
 0x60c   :  { %1594 = vadd.xlane.f32.xlu0 %v1593_v63 }
 0x60d   :  { %v3905_v53 = vpop.f32.mrb[16].mxu0 }
 0x60e   :  { %v1805_v54 = vadd.f32 %v3905_v53, %v1720_v52  ;;  %v1799_v55 = vpop.f32.mrb[17].mxu0 }
 0x60f   :  { %v1800_v57 = vadd.f32 %v1799_v55, %v1720_v52 }
 0x611   :  { %v4720_v22 = vpack.i.bf16 %v1805_v54, %v1800_v57  ;;  %v4095_v23 = vpack.c.bf16 %v1805_v54, %v1800_v57  ;;  %v3908_v59 = vpop.f32.mrb[18].mxu0 }
 0x61c   :  { %4196 = vrot.lane.b32.xlu1 %v4720_v22, %s4368_s7 }
 0x620   :  { %4206 = vrot.lane.b32.xlu1 %v4720_v22, %s4367_s0 }
 0x698   :  { %v1598_v7 = vpop.xlane.xlu1 %1597 }
 0x699   :  { %v1601_v3 = vmul.f32 0.03125, %v1598_v7  ;;  %v1595_v5 = vpop.xlane.xlu0 %1594 }
 0x69a   :  { %v1600_v4 = vmul.f32 0.03125, %v1595_v5 }
 0x69b   :  { %v1603_v6 = vsub.f32 %v1592_v60, %v1601_v3  ;;  %v1815_v60 = vadd.f32 %v3908_v59, %v1720_v52 }
 0x69c   :  { %v1602_v8 = vsub.f32 %v1591_v61, %v1600_v4  ;;  %v1809_v61 = vpop.f32.mrb[19].mxu0  ;;  %v4738_v1 = vpop.permute.xlu1 %4196 }
 0x69d   :  { %v1605_v15 = vmul.f32 %v1603_v6, %v1603_v6  ;;  %v1810_v62 = vadd.f32 %v1809_v61, %v1720_v52  ;;  %v4199_v2 = vunpack.i.h.bf16 %v4738_v1  ;;  %v4198_v7 = vunpack.i.l.bf16 %v4738_v1 }
 0x69e   :  { %v1604_v12 = vmul.f32 %v1602_v8, %v1602_v8 }
 0x69f   :  { %v1609_v16 = vsel %vm65_vm0, %v1605_v15, 0.0  ;;  %v4729_v63 = vpack.i.bf16 %v1815_v60, %v1810_v62  ;;  %v4099_v0 = vpack.c.bf16 %v1815_v60, %v1810_v62  ;;  %v4103_v24 = vpack.c.bf16 %v4199_v2, %v4198_v7 }
 0x6a0   :  { %v1606_v13 = vsel %vm65_vm0, %v1604_v12, 0.0  ;;  %v4742_v3 = vpop.permute.xlu1 %4206 }
 0x6a1   :  { %1607 = vadd.xlane.f32.xlu0 %v1606_v13  ;;  %4101 = vmatpush3.bf16.xpose.msk.msra.mxu0 %vm4716_vm5, %v4099_v0  ;;  %v4209_v5 = vunpack.i.h.bf16 %v4742_v3  ;;  %v4208_v4 = vunpack.i.l.bf16 %v4742_v3 }
 0x6a2   :  { %4211 = vrot.lane.b32.xlu1 %v4729_v63, %s4367_s0  ;;  %4106 = vmatprep.subr.bf16.mxu0 %v4376_v32 }
 0x6a3   :  { %v4111_v28 = vpack.c.bf16 %v4209_v5, %v4208_v4 }
 0x6a5   :  { %1610 = vadd.xlane.f32.xlu0 %v1609_v16 }
 0x6bb   :  { %4201 = vrot.lane.b32.xlu0 %v4729_v63, %s4368_s7 }
 0x714   :  { %v4750_v13 = vpop.permute.xlu1 %4211 }
 0x715   :  { %v4214_v15 = vunpack.i.h.bf16 %v4750_v13  ;;  %v4213_v16 = vunpack.i.l.bf16 %v4750_v13 }
 0x717   :  { %v4115_v11 = vpack.c.bf16 %v4214_v15, %v4213_v16 }
 0x72e   :  { %v1608_v33 = vpop.xlane.xlu0 %1607 }
 0x72f   :  { %v1612_v34 = vmul.f32 0.03125, %v1608_v33 }
 0x731   :  { %v1614_v35 = vadd.f32 1e-05, %v1612_v34 }
 0x732   :  { %v1611_v36 = vpop.xlane.xlu0 %1610 }
 0x733   :  { %4297 = vrsqrt.f32 %v1614_v35  ;;  %v1613_v37 = vmul.f32 0.03125, %v1611_v36 }
 0x735   :  { %v1615_v38 = vadd.f32 1e-05, %v1613_v37 }
 0x737   :  { %4299 = vrsqrt.f32 %v1615_v38 }
 0x73d   :  { %v4298_v43 = vpop.eup %4297 }
 0x73e   :  { %v1618_v44 = vmul.f32 %v4298_v43, %v1602_v8 }
 0x740   :  { %v1624_v46 = vmul.f32 %v1623_v42, %v1618_v44 }
 0x741   :  { %v4300_v47 = vpop.eup %4299 }
 0x742   :  { %v1619_v48 = vmul.f32 %v4300_v47, %v1603_v6  ;;  %v4703_v49 = vadd.f32 %v1629_v45, %v1624_v46  ;;  %v4746_v6 = vpop.permute.xlu0 %4201 }
 0x743   :  { %v4204_v8 = vunpack.i.h.bf16 %v4746_v6  ;;  %v4203_v12 = vunpack.i.l.bf16 %v4746_v6 }
 0x744   :  { %v1625_v50 = vmul.f32 %v1623_v42, %v1619_v48  ;;  %3892 = vmatprep.mubr.msk.f32.mxu1 %vm65_vm0, %v4703_v49 }
 0x745   :  { %v4107_v25 = vpack.c.bf16 %v4204_v8, %v4203_v12 }
 0x746   :  { %v4707_v51 = vadd.f32 %v1629_v45, %v1625_v50 }
 0x748   :  { %3893 = vmatmul.mubr.msk.f32.vlgmr.msra.gmra.mrb[20].mxu1 %vm65_vm0, %v4707_v51 }
 0x749   :  { %3913 = vmatprep.mubr.msk.f32.mxu1 %vm4369_vm1, %v4366_v14  ;;  %4097 = vmatpush3.bf16.xpose.msk.msra.mxu1 %vm4716_vm5, %v4095_v23 }
 0x74a   :  { %4102 = vmatprep.subr.bf16.mxu1 %v4376_v32 }
 0x81b   :  { %v3894_v19 = vpop.f32.mrb[20].mxu1 }
 0x81c   :  { %v1714_v20 = vadd.f32 %v3894_v19, %v1635_v18  ;;  %v1708_v21 = vpop.f32.mrb[21].mxu1 }
 0x81d   :  { %v1709_v26 = vadd.f32 %v1708_v21, %v1635_v18 }
 0x81e   :  { %1822 = vrot.lane.b32.xlu1 %v1714_v20, %s4368_s7  ;;  %3921 = vmatmul.mubr.msk.f32.vlgmr.msra.gmra.mrb[20].mxu0 %vm163_vm2, %v1714_v20 }
 0x81f   :  { %1820 = vrot.lane.b32.xlu0 %v1709_v26, %s4368_s7  ;;  %3914 = vmatmul.mubr.msk.f32.vlgmr.msra.gmra.mrb[22].mxu1 %vm163_vm2, %v1709_v26 }
 0x820   :  { %4105 = vmatpush3.bf16.xpose.msk.msra.mxu1 %vm4716_vm5, %v4103_v24  ;;  %4109 = vmatpush3.bf16.xpose.msk.msra.mxu0 %vm4716_vm5, %v4107_v25 }
 0x821   :  { %3934 = vmatprep.mubr.msk.f32.mxu0 %vm4369_vm1, %v4366_v14  ;;  %4114 = vmatprep.subr.bf16.mxu0 %v4376_v32 }
 0x822   :  { %4221 = vrot.lane.b32.xlu1 %v4729_v63, %s4370_s8  ;;  %3927 = vmatprep.mubr.msk.f32.mxu1 %vm4369_vm1, %v4366_v14 }
 0x823   :  { %4216 = vrot.lane.b32.xlu0 %v4720_v22, %s4370_s8  ;;  %4110 = vmatprep.subr.bf16.mxu1 %v4376_v32 }
 0x826   :  { %1826 = vrot.lane.b32.xlu1 %v1714_v20, %s4367_s0 }
 0x827   :  { %1824 = vrot.lane.b32.xlu0 %v1709_v26, %s4367_s0 }
 0x82a   :  { %1830 = vrot.lane.b32.xlu1 %v1714_v20, %s4370_s8 }
 0x82b   :  { %1828 = vrot.lane.b32.xlu0 %v1709_v26, %s4370_s8 }
 0x890   :  { %v1823_v27 = vpop.permute.xlu1 %1822 }
 0x891   :  { %v1821_v29 = vpop.permute.xlu0 %1820  ;;  %3935 = vmatmul.mubr.msk.f32.vlgmr.msra.gmra.mrb[22].mxu0 %vm163_vm2, %v1823_v27 }
 0x892   :  { %4117 = vmatpush3.bf16.xpose.msk.msra.mxu0 %vm4716_vm5, %v4115_v11  ;;  %3928 = vmatmul.mubr.msk.f32.vlgmr.msra.gmra.mrb[24].mxu1 %vm163_vm2, %v1821_v29 }
 0x893   :  { %4113 = vmatpush3.bf16.xpose.msk.msra.mxu1 %vm4716_vm5, %v4111_v28  ;;  %3948 = vmatprep.mubr.msk.f32.mxu0 %vm4369_vm1, %v4366_v14 }
 0x894   :  { %v4788_v30 = vpop.permute.xlu1 %4221  ;;  %4122 = vmatprep.subr.bf16.mxu0 %v4376_v32  ;;  %3941 = vmatprep.mubr.msk.f32.mxu1 %vm4369_vm1, %v4366_v14 }
 0x895   :  { %v4224_v31 = vunpack.i.h.bf16 %v4788_v30  ;;  %v4223_v33 = vunpack.i.l.bf16 %v4788_v30  ;;  %v4795_v34 = vpop.permute.xlu0 %4216  ;;  %4118 = vmatprep.subr.bf16.mxu1 %v4376_v32 }
 0x896   :  { %v4219_v35 = vunpack.i.h.bf16 %v4795_v34  ;;  %v4218_v36 = vunpack.i.l.bf16 %v4795_v34 }
 0x897   :  { %v4123_v37 = vpack.c.bf16 %v4224_v31, %v4223_v33 }
 0x898   :  { %v4119_v38 = vpack.c.bf16 %v4219_v35, %v4218_v36  ;;  %v1827_v39 = vpop.permute.xlu1 %1826 }
 0x899   :  { %v1825_v40 = vpop.permute.xlu0 %1824  ;;  %3949 = vmatmul.mubr.msk.f32.vlgmr.msra.gmra.mrb[24].mxu0 %vm163_vm2, %v1827_v39 }
 0x89a   :  { %4125 = vmatpush3.bf16.xpose.msk.msra.mxu0 %vm4716_vm5, %v4123_v37  ;;  %3942 = vmatmul.mubr.msk.f32.vlgmr.msra.gmra.mrb[26].mxu1 %vm163_vm2, %v1825_v40 }
 0x89b   :  { %4121 = vmatpush3.bf16.xpose.msk.msra.mxu1 %vm4716_vm5, %v4119_v38  ;;  %3962 = vmatprep.mubr.msk.f32.mxu0 %vm4369_vm1, %v4366_v14 }
 0x89c   :  { %3955 = vmatprep.mubr.msk.f32.mxu1 %vm4369_vm1, %v4366_v14  ;;  %4126 = vmatprep.subr.bf16.mxu1 %v4376_v32  ;;  %v1831_v42 = vpop.permute.xlu1 %1830 }
 0x89d   :  { %4132 = vmatprep.subr.bf16.mxu0 %v4376_v32  ;;  %v1829_v43 = vpop.permute.xlu0 %1828 }
 0x8a1   :  { %3963 = vmatmul.mubr.msk.f32.vlgmr.msra.gmra.mrb[26].mxu0 %vm163_vm2, %v1831_v42 }
 0x8a2   :  { %3956 = vmatmul.mubr.msk.f32.vlgmr.msra.gmra.mrb[28].mxu1 %vm163_vm2, %v1829_v43  ;;  %3983 = vmatprep.mubr.msk.f32.mxu0 %vm4369_vm1, %v4366_v14 }
 0x8a3   :  { %3969 = vmatprep.mubr.msk.f32.mxu1 %vm4369_vm1, %v4366_v14 }
 0x8f1   :  { %v2008_v44 = vpop.f32.mrb[20].mxu0 }
 0x8f2   :  { %v2469_v45 = vmul.f32 0.35355338, %v2008_v44  ;;  %v1932_v46 = vpop.f32.mrb[22].mxu1  ;;  %v3922_v47 = vpop.f32.mrb[21].mxu0 }
 0x8f3   :  { %v2468_v48 = vmul.f32 0.35355338, %v1932_v46  ;;  %v3915_v50 = vpop.f32.mrb[23].mxu1 }
 0x8f4   :  { %v2479_v52 = vsel %vm1500_vm3, %v2469_v45, -inf }
 0x8f5   :  { %2480 = vmax.xlane.f32.xlu1 %v2479_v52  ;;  %v2476_v53 = vsel %vm1500_vm3, %v2468_v48, -inf }
 0x8f6   :  { %2477 = vmax.xlane.f32.xlu0 %v2476_v53 }
 0x964   :  { %v2160_v54 = vpop.f32.mrb[22].mxu0 }
 0x965   :  { %v2084_v55 = vpop.f32.mrb[24].mxu1  ;;  %v3936_v57 = vpop.f32.mrb[23].mxu0  ;;  %v2471_v59 = vmul.f32 0.35355338, %v2160_v54 }
 0x966   :  { %v2470_v58 = vmul.f32 0.35355338, %v2084_v55  ;;  %v3929_v23 = vpop.f32.mrb[25].mxu1 }
 0x967   :  { %v2485_v62 = vsel %vm1500_vm3, %v2471_v59, -inf }
 0x968   :  { %v2482_v60 = vsel %vm1500_vm3, %v2470_v58, -inf }
 0x969   :  { %2483 = vmax.xlane.f32.xlu0 %v2482_v60 }
 0x96c   :  { %v2312_v61 = vpop.f32.mrb[24].mxu0 }
 0x96d   :  { %v2473_v0 = vmul.f32 0.35355338, %v2312_v61  ;;  %v2236_v2 = vpop.f32.mrb[26].mxu1  ;;  %2486 = vmax.xlane.f32.xlu0 %v2485_v62  ;;  %v3950_v7 = vpop.f32.mrb[25].mxu0 }
 0x96e   :  { %v2472_v5 = vmul.f32 0.35355338, %v2236_v2  ;;  %v3943_v4 = vpop.f32.mrb[27].mxu1 }
 0x96f   :  { %v2491_v8 = vsel %vm1500_vm3, %v2473_v0, -inf }
 0x970   :  { %v2488_v12 = vsel %vm1500_vm3, %v2472_v5, -inf }
 0x971   :  { %2489 = vmax.xlane.f32.xlu1 %v2488_v12  ;;  %2492 = vmax.xlane.f32.xlu0 %v2491_v8 }
 0x974   :  { %v2464_v15 = vpop.f32.mrb[26].mxu0 }
 0x975   :  { %v2475_v16 = vmul.f32 0.35355338, %v2464_v15  ;;  %v2388_v18 = vpop.f32.mrb[28].mxu1  ;;  %v3964_v19 = vpop.f32.mrb[27].mxu0 }
 0x976   :  { %v2474_v20 = vmul.f32 0.35355338, %v2388_v18  ;;  %v3957_v21 = vpop.f32.mrb[29].mxu1 }
 0x977   :  { %v2497_v24 = vsel %vm1500_vm3, %v2475_v16, -inf }
 0x978   :  { %2498 = vmax.xlane.f32.xlu0 %v2497_v24  ;;  %v2494_v25 = vsel %vm1500_vm3, %v2474_v20, -inf }
 0x979   :  { %2495 = vmax.xlane.f32.xlu1 %v2494_v25 }
 0x982   :  { %v2481_v26 = vpop.xlane.xlu1 %2480 }
 0x983   :  { %v2501_v11 = vsub.f32 %v2469_v45, %v2481_v26  ;;  %v2478_v28 = vpop.xlane.xlu0 %2477 }
 0x985   :  { %v2510_v27 = vmul.f32 1.442695, %v2501_v11 }
 0x987   :  { %4301 = vpow2.f32 %v2510_v27 }
 0x98a   :  { %4226 = vrot.lane.b32.xlu1 %v4720_v22, %s4371_s9  ;;  %v2500_v22 = vsub.f32 %v2468_v48, %v2478_v28 }
 0x98c   :  { %v2508_v29 = vmul.f32 1.442695, %v2500_v22 }
 0x98e   :  { %4236 = vrot.lane.b32.xlu1 %v4738_v1, %s4371_s9  ;;  %4231 = vrot.lane.b32.xlu0 %v4729_v63, %s4371_s9  ;;  %4303 = vpow2.f32 %v2508_v29 }
 0x991   :  { %v4838_v1 = vpop.eup %4301 }
 0x992   :  { %4246 = vrot.lane.b32.xlu0 %v4742_v3, %s4371_s9  ;;  %4241 = vrot.lane.b32.xlu1 %v4746_v6, %s4371_s9  ;;  %v2527_v63 = vsel %vm1500_vm3, %v4838_v1, 0.0 }
 0x996   :  { %4251 = vrot.lane.b32.xlu1 %v4750_v13, %s4371_s9 }
 0x998   :  { %v4842_v3 = vpop.eup %4303 }
 0x999   :  { %v2524_v6 = vsel %vm1500_vm3, %v4842_v3, 0.0 }
 0x9b1   :  { %2528 = vadd.xlane.f32.xlu0 %v2527_v63 }
 0x9ba   :  { %2525 = vadd.xlane.f32.xlu1 %v2524_v6 }
 0x9f6   :  { %v2484_v13 = vpop.xlane.xlu0 %2483 }
 0x9f7   :  { %v2502_v31 = vsub.f32 %v2470_v58, %v2484_v13 }
 0x9f9   :  { %v2512_v33 = vmul.f32 1.442695, %v2502_v31 }
 0x9fa   :  { %v2487_v35 = vpop.xlane.xlu0 %2486 }
 0x9fb   :  { %4305 = vpow2.f32 %v2512_v33  ;;  %v2503_v36 = vsub.f32 %v2471_v59, %v2487_v35 }
 0x9fd   :  { %v2514_v37 = vmul.f32 1.442695, %v2503_v36 }
 0x9fe   :  { %v2490_v38 = vpop.xlane.xlu1 %2489  ;;  %v2493_v39 = vpop.xlane.xlu0 %2492 }
 0x9ff   :  { %4307 = vpow2.f32 %v2514_v37  ;;  %v2504_v40 = vsub.f32 %v2472_v5, %v2490_v38  ;;  %v2505_v42 = vsub.f32 %v2473_v0, %v2493_v39 }
 0xa01   :  { %v2516_v43 = vmul.f32 1.442695, %v2504_v40  ;;  %v2518_v44 = vmul.f32 1.442695, %v2505_v42 }
 0xa03   :  { %4309 = vpow2.f32 %v2516_v43 }
 0xa04   :  { %4311 = vpow2.f32 %v2518_v44 }
 0xa05   :  { %v4846_v45 = vpop.eup %4305  ;;  %v2499_v46 = vpop.xlane.xlu0 %2498 }
 0xa06   :  { %v2507_v47 = vsub.f32 %v2475_v16, %v2499_v46  ;;  %v2496_v48 = vpop.xlane.xlu1 %2495  ;;  %v2530_v50 = vsel %vm1500_vm3, %v4846_v45, 0.0 }
 0xa07   :  { %v2506_v52 = vsub.f32 %v2474_v20, %v2496_v48  ;;  %2531 = vadd.xlane.f32.xlu1 %v2530_v50 }
 0xa08   :  { %v2522_v53 = vmul.f32 1.442695, %v2507_v47 }
 0xa09   :  { %v4850_v54 = vpop.eup %4307  ;;  %v2520_v55 = vmul.f32 1.442695, %v2506_v52  ;;  %v4232_v19 = vpop.permute.xlu0 %4231 }
 0xa0a   :  { %4313 = vpow2.f32 %v2522_v53  ;;  %v4227_v57 = vpop.permute.xlu1 %4226  ;;  %v2533_v58 = vsel %vm1500_vm3, %v4850_v54, 0.0  ;;  %v4234_v11 = vunpack.i.h.bf16 %v4232_v19  ;;  %v4233_v27 = vunpack.i.l.bf16 %v4232_v19 }
 0xa0b   :  { %4315 = vpow2.f32 %v2520_v55  ;;  %v4229_v23 = vunpack.i.h.bf16 %v4227_v57  ;;  %v4228_v59 = vunpack.i.l.bf16 %v4227_v57  ;;  %2534 = vadd.xlane.f32.xlu0 %v2533_v58 }
 0xa0c   :  { %v4130_v63 = vpack.c.bf16 %v4234_v11, %v4233_v27 }
 0xa0d   :  { %v4854_v60 = vpop.eup %4309  ;;  %v4127_v61 = vpack.c.bf16 %v4229_v23, %v4228_v59  ;;  %v4247_v21 = vpop.permute.xlu0 %4246 }
 0xa0e   :  { %v4856_v62 = vpop.eup %4311  ;;  %v4237_v0 = vpop.permute.xlu1 %4236  ;;  %v2536_v2 = vsel %vm1500_vm3, %v4854_v60, 0.0  ;;  %v4249_v35 = vunpack.i.h.bf16 %v4247_v21  ;;  %v4248_v36 = vunpack.i.l.bf16 %v4247_v21 }
 0xa0f   :  { %v4239_v7 = vunpack.i.h.bf16 %v4237_v0  ;;  %v4238_v5 = vunpack.i.l.bf16 %v4237_v0  ;;  %4128 = vmatpush3.bf16.msra.mxu1 %v4127_v61  ;;  %v2539_v4 = vsel %vm1500_vm3, %v4856_v62, 0.0  ;;  %2537 = vadd.xlane.f32.xlu1 %v2536_v2 }
 0xa10   :  { %2540 = vadd.xlane.f32.xlu0 %v2539_v4  ;;  %4129 = vmatprep.subr.bf16.mxu1 %v4376_v32  ;;  %v4139_v39 = vpack.c.bf16 %v4249_v35, %v4248_v36 }
 0xa11   :  { %v4133_v8 = vpack.c.bf16 %v4239_v7, %v4238_v5 }
 0xa12   :  { %v4242_v20 = vpop.permute.xlu1 %4241 }
 0xa13   :  { %4134 = vmatpush3.bf16.msra.mxu0 %v4133_v8  ;;  %v4244_v6 = vunpack.i.h.bf16 %v4242_v20 }
 0xa14   :  { %v4863_v12 = vpop.eup %4313  ;;  %4138 = vmatprep.subr.bf16.mxu0 %v4376_v32 }
 0xa15   :  { %v4866_v15 = vpop.eup %4315  ;;  %v2545_v16 = vsel %vm1500_vm3, %v4863_v12, 0.0 }
 0xa16   :  { %2546 = vadd.xlane.f32.xlu0 %v2545_v16  ;;  %v2542_v18 = vsel %vm1500_vm3, %v4866_v15, 0.0  ;;  %v4252_v24 = vpop.permute.xlu1 %4251  ;;  %v25_v16 = vld [vmem:[%s5024_s2 + $0x20] sm:$0xff] }
 0xa17   :  { %2543 = vadd.xlane.f32.xlu1 %v2542_v18  ;;  %v4254_v40 = vunpack.i.h.bf16 %v4252_v24  ;;  %v4253_v42 = vunpack.i.l.bf16 %v4252_v24 }
 0xa19   :  { %v4142_v48 = vpack.c.bf16 %v4254_v40, %v4253_v42  ;;  %v3228_v40 = vsub.s32 4, %v4435_v9  ;;  %v4938_v42 = vld [vmem:[%s5026_s4] sm:$0xff] }
 0xa28   :  { %4261 = vrot.lane.b32.xlu1 %v4788_v30, %s4371_s9  ;;  %v4243_v30 = vunpack.i.l.bf16 %v4242_v20 }
 0xa2a   :  { %v4136_v13 = vpack.c.bf16 %v4244_v6, %v4243_v30 }
 0xa2c   :  { %4256 = vrot.lane.b32.xlu0 %v4795_v34, %s4371_s9 }
 0xa3e   :  { %v2529_v25 = vpop.xlane.xlu0 %2528 }
 0xa47   :  { %v2526_v26 = vpop.xlane.xlu1 %2525 }
 0xa48   :  { %4317 = vrcp.f32 %v2526_v26 }
 0xa49   :  { %4319 = vrcp.f32 %v2529_v25 }
 0xa52   :  { %v4318_v28 = vpop.eup %4317 }
 0xa53   :  { %v2549_v22 = vmul.f32 %v4318_v28, %v4842_v3  ;;  %v4320_v29 = vpop.eup %4319 }
 0xa54   :  { %v2551_v34 = vmul.f32 %v4320_v29, %v4838_v1 }
 0xa55   :  { %3970 = vmatmul.mubr.msk.f32.vlgmr.msra.gmra.mrb[30].mxu1 %vm1500_vm3, %v2549_v22 }
 0xa56   :  { %4131 = vmatpush3.bf16.msra.mxu1 %v4130_v63  ;;  %3976 = vmatprep.mubr.msk.f32.mxu1 %vm4369_vm1, %v4366_v14 }
 0xa57   :  { %4135 = vmatprep.subr.bf16.mxu1 %v4376_v32 }
 0xa59   :  { %3977 = vmatmul.mubr.msk.f32.vlgmr.msra.gmra.mrb[32].mxu1 %vm1500_vm3, %v2551_v34 }
 0xa5a   :  { %4137 = vmatpush3.bf16.msra.mxu1 %v4136_v13  ;;  %3990 = vmatprep.mubr.msk.f32.mxu1 %vm4369_vm1, %v4366_v14 }
 0xa5b   :  { %4141 = vmatprep.subr.bf16.mxu1 %v4376_v32 }
 0xa94   :  { %v2532_v3 = vpop.xlane.xlu1 %2531 }
 0xa95   :  { %4321 = vrcp.f32 %v2532_v3 }
 0xa98   :  { %v2535_v31 = vpop.xlane.xlu0 %2534 }
 0xa99   :  { %4323 = vrcp.f32 %v2535_v31 }
 0xa9c   :  { %v2538_v33 = vpop.xlane.xlu1 %2537 }
 0xa9d   :  { %v2541_v37 = vpop.xlane.xlu0 %2540  ;;  %4325 = vrcp.f32 %v2538_v33 }
 0xa9e   :  { %4327 = vrcp.f32 %v2541_v37 }
 0xa9f   :  { %v4322_v1 = vpop.eup %4321 }
 0xaa0   :  { %v2553_v38 = vmul.f32 %v4322_v1, %v4846_v45 }
 0xaa2   :  { %3984 = vmatmul.mubr.msk.f32.vlgmr.msra.gmra.mrb[28].mxu0 %vm1500_vm3, %v2553_v38 }
 0xaa3   :  { %v4324_v43 = vpop.eup %4323  ;;  %v2547_v44 = vpop.xlane.xlu0 %2546  ;;  %4140 = vmatpush3.bf16.msra.mxu0 %v4139_v39  ;;  %3997 = vmatprep.mubr.msk.f32.mxu0 %vm4369_vm1, %v4366_v14 }
 0xaa4   :  { %v2555_v46 = vmul.f32 %v4324_v43, %v4850_v54  ;;  %4329 = vrcp.f32 %v2547_v44  ;;  %v2544_v47 = vpop.xlane.xlu1 %2543  ;;  %4144 = vmatprep.subr.bf16.mxu0 %v4376_v32  ;;  %v3229_v43 = vrot.slane %v4938_v42, %v3228_v40 }
 0xaa5   :  { %4331 = vrcp.f32 %v2544_v47 }
 0xaa6   :  { %3991 = vmatmul.mubr.msk.f32.vlgmr.msra.gmra.mrb[34].mxu1 %vm1500_vm3, %v2555_v46 }
 0xaa7   :  { %v4326_v45 = vpop.eup %4325  ;;  %v4257_v50 = vpop.permute.xlu0 %4256  ;;  %4143 = vmatpush3.bf16.msra.mxu1 %v4142_v48  ;;  %4004 = vmatprep.mubr.msk.f32.mxu1 %vm4369_vm1, %v4366_v14 }
 0xaa8   :  { %v4328_v52 = vpop.eup %4327  ;;  %v2557_v53 = vmul.f32 %v4326_v45, %v4854_v60  ;;  %v4259_v55 = vunpack.i.h.bf16 %v4257_v50  ;;  %v4258_v57 = vunpack.i.l.bf16 %v4257_v50  ;;  %v4262_v54 = vpop.permute.xlu1 %4261  ;;  %4147 = vmatprep.subr.bf16.mxu1 %v4376_v32 }
 0xaa9   :  { %v2559_v58 = vmul.f32 %v4328_v52, %v4856_v62  ;;  %v4264_v23 = vunpack.i.h.bf16 %v4262_v54  ;;  %v4263_v59 = vunpack.i.l.bf16 %v4262_v54 }
 0xaaa   :  { %v4145_v61 = vpack.c.bf16 %v4259_v55, %v4258_v57  ;;  %3998 = vmatmul.mubr.msk.f32.vlgmr.msra.gmra.mrb[30].mxu0 %vm1500_vm3, %v2557_v53 }
 0xaab   :  { %v4148_v0 = vpack.c.bf16 %v4264_v23, %v4263_v59  ;;  %4005 = vmatmul.mubr.msk.f32.vlgmr.msra.gmra.mrb[36].mxu1 %vm1500_vm3, %v2559_v58  ;;  %4011 = vmatprep.mubr.msk.f32.mxu0 %vm4369_vm1, %v4366_v14 }
 0xaac   :  { %4146 = vmatpush3.bf16.msra.mxu0 %v4145_v61  ;;  %4018 = vmatprep.mubr.msk.f32.mxu1 %vm4369_vm1, %v4366_v14  ;;  %v31_v14 = vld [vmem:[%s5024_s2 + $0x50] sm:$0xff] }
 0xaad   :  { %4149 = vmatpush3.bf16.msra.mxu1 %v4148_v0  ;;  %v4150_v18 = vpack.c.bf16 %v31_v14, %v25_v16  ;;  %v47_v16 = vld [vmem:[%s5025_s3 + $0x10] sm:$0xff] }
 0xaae   :  { %v4330_v60 = vpop.eup %4329 }
 0xaaf   :  { %v4332_v32 = vpop.eup %4331  ;;  %v2563_v62 = vmul.f32 %v4330_v60, %v4863_v12  ;;  %v37_v12 = vld [vmem:[%s5024_s2 + $0x80] sm:$0xff]  ;;  %4151 = vmatprep.subr.bf16.mxu0 %v4150_v18 }
 0xab0   :  { %v2561_v2 = vmul.f32 %v4332_v32, %v4866_v15  ;;  %v43_v15 = vld [vmem:[%s5024_s2 + $0xb0] sm:$0xff]  ;;  %v32_v32 = vld [vmem:[%s5024_s2 + $0x58] sm:$0xff] }
 0xab1   :  { %4019 = vmatmul.mubr.msk.f32.vlgmr.msra.gmra.mrb[38].mxu1 %vm1500_vm3, %v2563_v62  ;;  %v4154_v19 = vpack.c.bf16 %v43_v15, %v37_v12  ;;  %v49_v15 = vld [vmem:[%s5025_s3 + $0x20] sm:$0xff] }
 0xab2   :  { %4012 = vmatmul.mubr.msk.f32.vlgmr.msra.gmra.mrb[32].mxu0 %vm1500_vm3, %v2561_v2  ;;  %v38_v2 = vld [vmem:[%s5024_s2 + $0x88] sm:$0xff] }
 0xab3   :  { %4153 = vmatpush3.bf16.msra.mxu0 %v4150_v18  ;;  %v48_v18 = vld [vmem:[%s5025_s3 + $0x18] sm:$0xff] }
 0xab4   :  { %4155 = vmatprep.subr.bf16.mxu0 %v4154_v19  ;;  %v4170_v12 = vpack.c.bf16 %v48_v18, %v47_v16  ;;  %v3555_v16 = vrot.slane %v4699_v41, %v1634_v17 }
 0xab7   :  { %4157 = vmatpush3.bf16.msra.mxu0 %v4154_v19  ;;  %v50_v19 = vld [vmem:[%s5025_s3 + $0x28] sm:$0xff] }
 0xb28   :  { %v2639_v7 = vpop.f32.mrb[30].mxu1 }
 0xb29   :  { %v3971_v5 = vpop.f32.mrb[31].mxu1 }
 0xb2c   :  { %v2718_v4 = vpop.f32.mrb[32].mxu1 }
 0xb2d   :  { %v3978_v8 = vpop.f32.mrb[33].mxu1 }
 0xb2e   :  { %v46_v8 = vld [vmem:[%s5025_s3 + $0x8] sm:$0xff] }
 0xb75   :  { %v2797_v20 = vpop.f32.mrb[28].mxu0 }
 0xb76   :  { %3198 = vrot.lane.b32.xlu0 %v2797_v20, %s4373_s19  ;;  %v3985_v21 = vpop.f32.mrb[29].mxu0  ;;  %v4174_v20 = vpack.c.bf16 %v50_v19, %v49_v15 }
 0xb79   :  { %v2876_v24 = vpop.f32.mrb[34].mxu1 }
 0xb7a   :  { %3200 = vrot.lane.b32.xlu1 %v2876_v24, %s4373_s19  ;;  %v3992_v25 = vpop.f32.mrb[35].mxu1 }
 0xb7d   :  { %v2955_v26 = vpop.f32.mrb[30].mxu0 }
 0xb7e   :  { %v3034_v11 = vpop.f32.mrb[36].mxu1  ;;  %3206 = vrot.lane.b32.xlu0 %v2955_v26, %s4374_s20  ;;  %v3999_v27 = vpop.f32.mrb[31].mxu0 }
 0xb7f   :  { %3208 = vrot.lane.b32.xlu1 %v3034_v11, %s4374_s20  ;;  %v4006_v28 = vpop.f32.mrb[37].mxu1 }
 0xb80   :  { %v3342_v28 = vrot.slane %v4699_v41, %v63_v10  ;;  %v51_v10 = vld [vmem:[%s5025_s3 + $0x30] sm:$0xff] }
 0xb84   :  { %v3192_v22 = vpop.f32.mrb[38].mxu1 }
 0xb85   :  { %v3113_v29 = vpop.f32.mrb[32].mxu0  ;;  %3216 = vrot.lane.b32.xlu1 %v3192_v22, %s4375_s21  ;;  %v4020_v63 = vpop.f32.mrb[39].mxu1 }
 0xb86   :  { %3214 = vrot.lane.b32.xlu0 %v3113_v29, %s4375_s21  ;;  %v4013_v6 = vpop.f32.mrb[33].mxu0  ;;  %v3348_v29 = vrot.slane %v4699_v41, %v1508_v56 }
 0xbe8   :  { %v3199_v34 = vpop.permute.xlu0 %3198 }
 0xbe9   :  { %v3220_v31 = vsel %vm163_vm2, %v2639_v7, %v3199_v34  ;;  %v44_v7 = vld [vmem:[%s5024_s2 + $0xb8] sm:$0xff] }
 0xbea   :  { %v4162_v5 = vpack.c.bf16 %v44_v7, %v38_v2 }
 0xbec   :  { %v3201_v30 = vpop.permute.xlu1 %3200 }
 0xbed   :  { %v3221_v35 = vsel %vm163_vm2, %v2718_v4, %v3201_v30  ;;  %v45_v4 = vld [vmem:[%s5025_s3] sm:$0xff] }
 0xbee   :  { %v4166_v14 = vpack.c.bf16 %v46_v8, %v45_v4 }
 0xbf0   :  { %v3207_v3 = vpop.permute.xlu0 %3206  ;;  %4167 = vmatprep.subr.bf16.mxu0 %v4166_v14 }
 0xbf1   :  { %v3209_v13 = vpop.permute.xlu1 %3208  ;;  %v3222_v36 = vsel %vm1500_vm3, %v3220_v31, %v3207_v3 }
 0xbf2   :  { %v3223_v1 = vsel %vm1500_vm3, %v3221_v35, %v3209_v13  ;;  %v3353_v35 = vsub.s32 5, %v4435_v9 }
 0xbf7   :  { %v3217_v33 = vpop.permute.xlu1 %3216 }
 0xbf8   :  { %v3215_v37 = vpop.permute.xlu0 %3214  ;;  %v3225_v39 = vsel %vm1503_vm4, %v3223_v1, %v3217_v33  ;;  %v52_v33 = vld [vmem:[%s5025_s3 + $0x38] sm:$0xff]  ;;  %s4377_s3 = smov [#allocation2]  }
 0xbf9   :  { %v3224_v38 = vsel %vm1503_vm4, %v3222_v36, %v3215_v37  ;;  %v4178_v56 = vpack.c.bf16 %v52_v33, %v51_v10  ;;  %v3354_v36 = vrot.slane %v4938_v42, %v3353_v35  ;;  %s3571_s30 = sshll.u32 %s4377_s3, 4  ;;  %s3572_s30 = int_to_ptr.vmem [resolvable:$true] %s3571_s30 }
 0xbfa   :  { %4029 = vmatprep.mubr.msk.f32.mxu0 %vm65_vm0, %v3224_v38  ;;  %s4342_s6 = scalar_lea.vmem %s3572_s30, 256  ;;  %p4347_p1 = scmp.lt.s32.totalorder %s3572_s30, %s3572_s30 }
 0xbfb   :  { %4030 = vmatmul.mubr.msk.f32.vlgmr.msra.gmra.mrb[34].mxu0 %vm65_vm0, %v3225_v39  ;;  %p4343_p0 = scmp.ne.s32.totalorder %s3572_s30, %s4342_s6  ;;  %p4348_p2 = scmp.lt.s32.totalorder %s4342_s6, %s4342_s6 }
 0xbfc   :  { %4169 = vmatpush3.bf16.msra.mxu0 %v4166_v14 }
 0xbfd   :  { %4171 = vmatprep.subr.bf16.mxu0 %v4170_v12  ;;  %p4349_p3 = por %p4348_p2, %p4347_p1 }
 0xbff   :  { %p4350_p4 = pnand %p4349_p3, %p4343_p0 }
 0xc00   :  { %4173 = vmatpush3.bf16.msra.mxu0 %v4170_v12  ;;  %v3561_v12 = vrot.slane %v4699_v41, %v3228_v40 }
 0xc01   :  { %4175 = vmatprep.subr.bf16.mxu0 %v4174_v20 }
 0xc04   :  { %4177 = vmatpush3.bf16.msra.mxu0 %v4174_v20 }
 0xc05   :  { %4179 = vmatprep.subr.bf16.mxu0 %v4178_v56 }
 0xc08   :  { %4181 = vmatpush3.bf16.msra.mxu0 %v4178_v56 }
 0xcce   :  { %v4031_v44 = vpop.f32.mrb[34].mxu0 }
 0xccf   :  { %v3308_v46 = vadd.f32 %v4031_v44, %v3229_v43  ;;  %v3302_v47 = vpop.f32.mrb[35].mxu0 }
 0xcd0   :  { %v3303_v48 = vadd.f32 %v3302_v47, %v3229_v43 }
 0xcd1   :  { %v3312_v45 = vadd.f32 %v3308_v46, %v4707_v51  ;;  %v3440_v46 = vsub.s32 6, %v4435_v9 }
 0xcd2   :  { %v3311_v50 = vadd.f32 %v3303_v48, %v4703_v49  ;;  %v26_v49 = vld [vmem:[%s5024_s2 + $0x28] sm:$0xff] }
 0xcd3   :  { %v3316_v52 = vsel %vm65_vm0, %v3312_v45, 0.0  ;;  %v4158_v62 = vpack.c.bf16 %v32_v32, %v26_v49  ;;  %v3441_v47 = vrot.slane %v4938_v42, %v3440_v46 }
 0xcd4   :  { %3317 = vadd.xlane.f32.xlu1 %v3316_v52  ;;  %v3313_v53 = vsel %vm65_vm0, %v3311_v50, 0.0 }
 0xcd5   :  { %3314 = vadd.xlane.f32.xlu0 %v3313_v53  ;;  %4159 = vmatprep.subr.bf16.mxu1 %v4158_v62 }
 0xcd6   :  { %4161 = vmatpush3.bf16.msra.mxu1 %v4158_v62 }
 0xcd7   :  { %4163 = vmatprep.subr.bf16.mxu1 %v4162_v5 }
 0xcda   :  { %4165 = vmatpush3.bf16.msra.mxu1 %v4162_v5 }
 0xd61   :  { %v3318_v55 = vpop.xlane.xlu1 %3317 }
 0xd62   :  { %v3320_v57 = vmul.f32 0.03125, %v3318_v55  ;;  %v3315_v54 = vpop.xlane.xlu0 %3314 }
 0xd63   :  { %v3319_v58 = vmul.f32 0.03125, %v3315_v54 }
 0xd64   :  { %v3322_v23 = vsub.f32 %v3312_v45, %v3320_v57 }
 0xd65   :  { %v3321_v59 = vsub.f32 %v3311_v50, %v3319_v58 }
 0xd66   :  { %v3324_v60 = vmul.f32 %v3322_v23, %v3322_v23 }
 0xd67   :  { %v3323_v61 = vmul.f32 %v3321_v59, %v3321_v59 }
 0xd68   :  { %v3328_v51 = vsel %vm65_vm0, %v3324_v60, 0.0 }
 0xd69   :  { %v3325_v0 = vsel %vm65_vm0, %v3323_v61, 0.0 }
 0xd6a   :  { %3326 = vadd.xlane.f32.xlu0 %v3325_v0 }
 0xd6e   :  { %3329 = vadd.xlane.f32.xlu0 %v3328_v51 }
 0xdf7   :  { %v3327_v21 = vpop.xlane.xlu0 %3326 }
 0xdf8   :  { %v3331_v24 = vmul.f32 0.03125, %v3327_v21 }
 0xdfa   :  { %v3333_v25 = vadd.f32 1e-05, %v3331_v24 }
 0xdfb   :  { %v3330_v26 = vpop.xlane.xlu0 %3329 }
 0xdfc   :  { %4333 = vrsqrt.f32 %v3333_v25  ;;  %v3332_v11 = vmul.f32 0.03125, %v3330_v26 }
 0xdfe   :  { %v3334_v27 = vadd.f32 1e-05, %v3332_v11 }
 0xe00   :  { %4335 = vrsqrt.f32 %v3334_v27 }
 0xe06   :  { %v4334_v22 = vpop.eup %4333 }
 0xe07   :  { %v3337_v63 = vmul.f32 %v4334_v22, %v3321_v59 }
 0xe09   :  { %v3343_v6 = vmul.f32 %v3342_v28, %v3337_v63 }
 0xe0a   :  { %v4336_v30 = vpop.eup %4335 }
 0xe0b   :  { %v3338_v34 = vmul.f32 %v4336_v30, %v3322_v23  ;;  %v3349_v13 = vadd.f32 %v3348_v29, %v3343_v6 }
 0xe0d   :  { %4040 = vmatprep.mubr.msk.f32.mxu1 %vm65_vm0, %v3349_v13  ;;  %v3344_v3 = vmul.f32 %v3342_v28, %v3338_v34 }
 0xe0f   :  { %v3350_v31 = vadd.f32 %v3348_v29, %v3344_v3 }
 0xe11   :  { %4041 = vmatmul.mubr.msk.f32.vlgmr.msra.gmra.mrb[40].mxu1 %vm65_vm0, %v3350_v31 }
 0xee4   :  { %v4042_v37 = vpop.f32.mrb[40].mxu1 }
 0xee5   :  { %v3433_v1 = vadd.f32 %v4042_v37, %v3354_v36  ;;  %v3427_v38 = vpop.f32.mrb[41].mxu1 }
 0xee6   :  { %v3428_v39 = vadd.f32 %v3427_v38, %v3354_v36 }
 0xee7   :  { %v3437_v44 = vmax.f32 %v3433_v1, 0.0 }
 0xee8   :  { %v3436_v43 = vmax.f32 %v3428_v39, 0.0 }
 0xeea   :  { %4059 = vmatprep.mubr.msk.f32.mxu0 %vm3442_vm6, %v3436_v43 }
 0xeeb   :  { %4060 = vmatmul.mubr.msk.f32.vlgmr.msra.gmra.mrb[36].mxu0 %vm3442_vm6, %v3437_v44 }
 0xfbe   :  { %v4061_v48 = vpop.f32.mrb[36].mxu0 }
 0xfbf   :  { %v3521_v45 = vadd.f32 %v4061_v48, %v3441_v47  ;;  %v3515_v50 = vpop.f32.mrb[37].mxu0 }
 0xfc0   :  { %v3516_v52 = vadd.f32 %v3515_v50, %v3441_v47 }
 0xfc1   :  { %v3525_v53 = vadd.f32 %v3521_v45, %v3350_v31 }
 0xfc2   :  { %v3524_v55 = vadd.f32 %v3516_v52, %v3349_v13 }
 0xfc3   :  { %v3529_v57 = vsel %vm65_vm0, %v3525_v53, 0.0 }
 0xfc4   :  { %3530 = vadd.xlane.f32.xlu0 %v3529_v57  ;;  %v3526_v54 = vsel %vm65_vm0, %v3524_v55, 0.0 }
 0xfc5   :  { %3527 = vadd.xlane.f32.xlu1 %v3526_v54 }
0x1051   :  { %v3531_v58 = vpop.xlane.xlu0 %3530 }
0x1052   :  { %v3533_v23 = vmul.f32 0.03125, %v3531_v58  ;;  %v3528_v59 = vpop.xlane.xlu1 %3527 }
0x1053   :  { %v3532_v61 = vmul.f32 0.03125, %v3528_v59 }
0x1054   :  { %v3535_v0 = vsub.f32 %v3525_v53, %v3533_v23 }
0x1055   :  { %v3534_v60 = vsub.f32 %v3524_v55, %v3532_v61 }
0x1056   :  { %v3537_v51 = vmul.f32 %v3535_v0, %v3535_v0 }
0x1057   :  { %v3536_v42 = vmul.f32 %v3534_v60, %v3534_v60 }
0x1058   :  { %v3541_v49 = vsel %vm65_vm0, %v3537_v51, 0.0 }
0x1059   :  { %3542 = vadd.xlane.f32.xlu0 %v3541_v49  ;;  %v3538_v32 = vsel %vm65_vm0, %v3536_v42, 0.0 }
0x105a   :  { %3539 = vadd.xlane.f32.xlu1 %v3538_v32 }
0x10e6   :  { %v3543_v62 = vpop.xlane.xlu0 %3542 }
0x10e7   :  { %v3545_v2 = vmul.f32 0.03125, %v3543_v62  ;;  %v3540_v7 = vpop.xlane.xlu1 %3539 }
0x10e8   :  { %v3544_v5 = vmul.f32 0.03125, %v3540_v7 }
0x10e9   :  { %v3547_v4 = vadd.f32 1e-05, %v3545_v2 }
0x10ea   :  { %v3546_v8 = vadd.f32 1e-05, %v3544_v5 }
0x10eb   :  { %4337 = vrsqrt.f32 %v3547_v4 }
0x10ec   :  { %4339 = vrsqrt.f32 %v3546_v8 }
0x10f5   :  { %v4338_v14 = vpop.eup %4337 }
0x10f6   :  { %v4340_v18 = vpop.eup %4339  ;;  %v3551_v15 = vmul.f32 %v4338_v14, %v3535_v0 }
0x10f7   :  { %v3550_v19 = vmul.f32 %v4340_v18, %v3534_v60 }
0x10f8   :  { %v3557_v20 = vmul.f32 %v3555_v16, %v3551_v15 }
0x10f9   :  { %v3556_v21 = vmul.f32 %v3555_v16, %v3550_v19 }
0x10fa   :  { %v3563_v24 = vadd.f32 %v3561_v12, %v3557_v20 }
0x10fb   :  { %v3562_v25 = vadd.f32 %v3561_v12, %v3556_v21 }
0x10fc   :  { %3565 = vst.msk [vmem:[#allocation2 + $0x8] sm:$0xff] %vm65_vm0, %v3563_v24 }
0x10fd   :  { %3564 = vst.msk [vmem:[#allocation2] sm:$0xff] %vm65_vm0, %v3562_v25 }
0x10fe   :  { %4353 = shalt.err (!%p4350_p4)
}
0x10ff   :  { %s4354_s4 = scalar_lea.hbm %s5027_s5, 256 }
0x1100   :  { %p4355_p5 = scmp.ne.s32.totalorder %s5027_s5, %s4354_s4  ;;  %p4358_p6 = scmp.lt.u32.totalorder %s4354_s4, %s5027_s5 }
0x1102   :  { %p4360_p7 = pnand %p4358_p6, %p4355_p5 }
0x1104   :  { %4363 = shalt.err (!%p4360_p7)
}
0x1105   :  { %s4378_s14 = smov 128  }
0x1106   :  { %3577 = dma.vmem_to_hbm [thread:$0]  %s3572_s30, 256, %s5027_s5, [#allocation3], %s4378_s14, %s4378_s14, %s4373_s19  }
0x1107   :  { %4364 = dma.done.wait [#allocation3], 256  }
0x1108   :  { %4365 = vsyncadd [#allocation3], 4294967040 }
0x1109   :  { %3581 = vsyncpa [#allocation3], 1 }

</bundles_post_ra>
